<compile_context>
chip_gen: v7x
topology: tpu7x:2x2x1
jax: 0.10.0
libtpu: 0.0.40
codegen_flags: <defaults>
</compile_context>

<pallas_src>
import jax
import jax.numpy as jnp
from jax.experimental import pallas as pl
from jax.experimental.pallas import tpu as pltpu

NUM_HEADS = 4
C_PAD = 128  # lane-dense classifier output width


def _layer_norm(v, g, b, eps=1e-5):
    mu = jnp.mean(v, axis=-1, keepdims=True)
    var = jnp.mean((v - mu) ** 2, axis=-1, keepdims=True)
    return (v - mu) * jax.lax.rsqrt(var + eps) * g + b


def caml_encoder_kernel(x_ref, lab_ref,
                        ln1g_ref, ln1b_ref,
                        wqkv_ref, bqkv_ref,
                        wo_ref, bo_ref,
                        ln2g_ref, ln2b_ref,
                        w1_ref, b1_ref, w2_ref, b2_ref,
                        wcls_ref, bcls_ref,
                        out_ref):
    """One grid step = one seed: [support; query] token slab, shared support."""
    x_tok = x_ref[0] + lab_ref[...]          # (n_x, D); label enc is zero on query rows
    n_x, D = x_tok.shape
    n_q = out_ref.shape[1]                   # n_query
    n_s = n_x - n_q                          # n_support
    dh = D // NUM_HEADS
    scale = 1.0 / (dh ** 0.5)

    # --- single LayerNorm pass over the whole token slab ---------------------
    h = _layer_norm(x_tok, ln1g_ref[...], ln1b_ref[...]).astype(jnp.bfloat16)   # (n_x, D)

    # --- fused QKV: one (n_x, D) x (D, 3D) bf16 MXU push, one bias add --------
    qkv = jnp.dot(h, wqkv_ref[...], preferred_element_type=jnp.float32) + bqkv_ref[...]
    q_all = qkv[n_s:, 0:D].astype(jnp.bfloat16)        # (n_q, D)  query rows only
    k_all = qkv[:, D:2 * D].astype(jnp.bfloat16)       # (n_x, D)
    v_all = qkv[:, 2 * D:3 * D].astype(jnp.bfloat16)   # (n_x, D)

    # mask: query i (token row n_s+i) attends to support tokens and itself
    row = jax.lax.broadcasted_iota(jnp.int32, (n_q, n_x), 0)
    col = jax.lax.broadcasted_iota(jnp.int32, (n_q, n_x), 1)
    allowed = (col < n_s) | (col == row + n_s)

    # --- multi-head attention, query-row output only --------------------------
    ctx_heads = []
    for hh in range(NUM_HEADS):
        sl = slice(hh * dh, (hh + 1) * dh)
        s = jax.lax.dot_general(q_all[:, sl], k_all[:, sl],
                                (((1,), (1,)), ((), ())),
                                preferred_element_type=jnp.float32) * scale   # (n_q, n_x)
        s = jnp.where(allowed, s, -jnp.inf)
        m = jnp.max(s, axis=-1, keepdims=True)
        p = jnp.exp(s - m)                                                    # f32
        denom = jnp.sum(p, axis=-1, keepdims=True)
        ctx = jnp.dot(p.astype(jnp.bfloat16), v_all[:, sl],
                      preferred_element_type=jnp.float32)                     # (n_q, dh)
        ctx_heads.append(ctx * pl.reciprocal(denom, approx=True))
    ctx_full = jnp.concatenate(ctx_heads, axis=-1).astype(jnp.bfloat16)       # (n_q, D)

    # single full-width output projection
    attn = jnp.dot(ctx_full, wo_ref[...],
                   preferred_element_type=jnp.float32) + bo_ref[...]

    # residual (query token's label add is zero, so base is the raw query feature)
    x0 = x_tok[n_s:] + attn                                                   # (n_q, D)

    # --- MLP block (pre-LN), query rows only ----------------------------------
    h2 = _layer_norm(x0, ln2g_ref[...], ln2b_ref[...]).astype(jnp.bfloat16)
    f = jnp.dot(h2, w1_ref[...], preferred_element_type=jnp.float32) + b1_ref[...]
    f = jax.nn.gelu(f, approximate=True)   # TODO(synk): PyTorch nn.GELU default is exact erf
    f = jnp.dot(f.astype(jnp.bfloat16), w2_ref[...],
                preferred_element_type=jnp.float32) + b2_ref[...]
    x0 = x0 + f

    # --- classifier (lane-dense, padded to 128 classes) -----------------------
    logits = jnp.dot(x0.astype(jnp.bfloat16), wcls_ref[...],
                     preferred_element_type=jnp.float32) + bcls_ref[...]      # (n_q, C_PAD)
    out_ref[...] = logits[None]


def prepare_params(params):
    """One-time parameter prep: fuse QKV, pad classifier lane-dense, cast to bf16."""
    D = params["wq"].shape[0]
    C = params["wcls"].shape[1]
    bf16 = lambda a: a.astype(jnp.bfloat16)

    wqkv = jnp.concatenate([params["wq"], params["wk"], params["wv"]], axis=1)   # (D, 3D)
    bqkv = jnp.concatenate([params["bq"], params["bk"], params["bv"]], axis=1)   # (1, 3D)
    wcls_pad = jnp.zeros((D, C_PAD), jnp.float32).at[:, :C].set(params["wcls"])
    bcls_pad = jnp.zeros((1, C_PAD), jnp.float32).at[:, :C].set(params["bcls"])

    return dict(
        label_emb=params["label_emb"],
        num_classes=C,
        ln1_g=params["ln1_g"], ln1_b=params["ln1_b"],
        wqkv=bf16(wqkv), bqkv=bqkv,
        wo=bf16(params["wo"]), bo=params["bo"],
        ln2_g=params["ln2_g"], ln2_b=params["ln2_b"],
        w1=bf16(params["w1"]), b1=params["b1"],
        w2=bf16(params["w2"]), b2=params["b2"],
        wcls=bf16(wcls_pad), bcls=bcls_pad,
    )


def transformer_encoder_forward(features, lab_full, n_support, prep):
    """Pallas call: one grid step per seed; lane-dense padded output."""
    n_seeds, n_x, D = features.shape
    n_query = n_x - n_support
    C = prep["num_classes"]

    weights = [lab_full,
               prep["ln1_g"], prep["ln1_b"],
               prep["wqkv"], prep["bqkv"],
               prep["wo"], prep["bo"],
               prep["ln2_g"], prep["ln2_b"],
               prep["w1"], prep["b1"], prep["w2"], prep["b2"],
               prep["wcls"], prep["bcls"]]

    def full_spec(a):
        nd = a.ndim
        return pl.BlockSpec(a.shape, lambda i, _nd=nd: (0,) * _nd)

    in_specs = ([pl.BlockSpec((1, n_x, D), lambda i: (i, 0, 0))]
                + [full_spec(w) for w in weights])
    out_spec = pl.BlockSpec((1, n_query, C_PAD), lambda i: (i, 0, 0))

    out = pl.pallas_call(
        caml_encoder_kernel,
        out_shape=jax.ShapeDtypeStruct((n_seeds, n_query, C_PAD), jnp.float32),
        grid_spec=pltpu.PrefetchScalarGridSpec(
            num_scalar_prefetch=0,
            grid=(n_seeds,),
            in_specs=in_specs,
            out_specs=out_spec),
        compiler_params=pltpu.CompilerParams(
            dimension_semantics=("parallel",)),
    )(features, *weights)

    return out.reshape(n_seeds * n_query, C_PAD)[:, :C]


def caml_forward(features, labels, n_support, bias_idx, prep):
    """Mirrors CAML.forward for cached features (inp.dim() == 3)."""
    n_seeds, n_x, d = features.shape
    n_query = n_x - n_support
    bias_idx = jnp.repeat(bias_idx, n_query)   # plumbed only
    # TODO(synk): with num_bias=1 the per-bias selection inside the (unavailable)
    # get_encoder() transformer is the identity, so bias_idx only needs plumbing here.

    # ELMES label encoding added to support tokens; query rows get zeros
    # (same labels for every seed, as in forward_imagenet_v2).
    sup_lab = prep["label_emb"][labels]                              # (n_support, d)
    lab_full = jnp.concatenate(
        [sup_lab, jnp.zeros((n_query, d), jnp.float32)], axis=0)     # (n_x, d)

    return transformer_encoder_forward(features, lab_full, n_support, prep)


def init_params(key, d, dff, c):
    """Deterministic synthetic weights for the transformer encoder."""
    ks = jax.random.split(key, 8)
    s = 0.02

    # ELMES (simplex equiangular tight frame) label embedding, embedded into dim d.
    simplex = jnp.sqrt(c / (c - 1.0)) * (jnp.eye(c) - jnp.ones((c, c)) / c)
    label_emb = jnp.zeros((c, d), jnp.float32).at[:, :c].set(simplex)

    def nrm(k, shape):
        return s * jax.random.normal(k, shape, jnp.float32)

    return dict(
        label_emb=label_emb,
        ln1_g=jnp.ones((1, d), jnp.float32), ln1_b=jnp.zeros((1, d), jnp.float32),
        wq=nrm(ks[0], (d, d)), wk=nrm(ks[1], (d, d)), wv=nrm(ks[2], (d, d)),
        bq=jnp.zeros((1, d), jnp.float32), bk=jnp.zeros((1, d), jnp.float32),
        bv=jnp.zeros((1, d), jnp.float32),
        wo=nrm(ks[3], (d, d)), bo=jnp.zeros((1, d), jnp.float32),
        ln2_g=jnp.ones((1, d), jnp.float32), ln2_b=jnp.zeros((1, d), jnp.float32),
        w1=nrm(ks[4], (d, dff)), b1=jnp.zeros((1, dff), jnp.float32),
        w2=nrm(ks[5], (dff, d)), b2=jnp.zeros((1, d), jnp.float32),
        wcls=nrm(ks[6], (d, c)), bcls=jnp.zeros((1, c), jnp.float32),
    )


if __name__ == "__main__":
    # 5-way / 1-shot style episode, 2 seeds, 3 queries per seed, fe_dim = 128.
    D, C, DFF = 128, 5, 512
    n_seeds, n_support, n_query = 2, 5, 3
    n_x = n_support + n_query

    key = jax.random.PRNGKey(0)
    k_feat, k_par = jax.random.split(key)

    # Cached feature vectors (inp.dim() == 3 path); the external feature_extractor
    # (ViT over 3x224x224 NCHW images) is out of scope here.
    # TODO(synk): non-cache path would require the external feature_extractor module.
    features = jax.random.normal(k_feat, (n_seeds, n_x, D), jnp.float32)
    labels = jnp.arange(n_support, dtype=jnp.int32) % C      # support labels
    bias_idx = jnp.zeros((n_seeds,), jnp.int32)              # num_bias = 1

    params = init_params(k_par, D, DFF, C)
    prep = prepare_params(params)   # one-time: QKV fusion, bf16 casts, classifier pad

    # TODO(synk): get_encoder()'s exact depth/width (encoder_size) is not in the
    # provided source; a single pre-LN transformer layer + query-token head is used
    # (the query-row-only restriction in the kernel is valid only for depth == 1).
    logits = caml_forward(features, labels, n_support, bias_idx, prep)
    jax.block_until_ready(logits)

    assert logits.shape == (n_seeds * n_query, C), logits.shape
    assert bool(jnp.all(jnp.isfinite(logits)))
    print("KERNEL_OK")
</pallas_src>

<mosaic_0001>
module attributes {stable_mosaic.version = 11 : i64} {
  func.func @caml_encoder_kernel(%arg0: i32, %arg1: memref<1x8x128xf32, #tpu.memory_space<vmem>>, %arg2: memref<8x128xf32, #tpu.memory_space<vmem>>, %arg3: memref<1x128xf32, #tpu.memory_space<vmem>>, %arg4: memref<1x128xf32, #tpu.memory_space<vmem>>, %arg5: memref<128x384xbf16, #tpu.memory_space<vmem>>, %arg6: memref<1x384xf32, #tpu.memory_space<vmem>>, %arg7: memref<128x128xbf16, #tpu.memory_space<vmem>>, %arg8: memref<1x128xf32, #tpu.memory_space<vmem>>, %arg9: memref<1x128xf32, #tpu.memory_space<vmem>>, %arg10: memref<1x128xf32, #tpu.memory_space<vmem>>, %arg11: memref<128x512xbf16, #tpu.memory_space<vmem>>, %arg12: memref<1x512xf32, #tpu.memory_space<vmem>>, %arg13: memref<512x128xbf16, #tpu.memory_space<vmem>>, %arg14: memref<1x128xf32, #tpu.memory_space<vmem>>, %arg15: memref<128x128xbf16, #tpu.memory_space<vmem>>, %arg16: memref<1x128xf32, #tpu.memory_space<vmem>>, %arg17: memref<1x3x128xf32, #tpu.memory_space<vmem>>) attributes {dimension_semantics = [#tpu.dimension_semantics<parallel>], iteration_bounds = array<i64: 2>, scalar_prefetch = 0 : i64, scratch_operands = 0 : i64, tpu.core_type = #tpu.core_type<tc>, window_params = [{transform_indices = @transform_0, window_bounds = array<i64: 1, 8, 128>}, {pipeline_mode = #tpu.pipeline_mode<synchronous>, transform_indices = @transform_1, window_bounds = array<i64: 8, 128>}, {pipeline_mode = #tpu.pipeline_mode<synchronous>, transform_indices = @transform_2, window_bounds = array<i64: 1, 128>}, {pipeline_mode = #tpu.pipeline_mode<synchronous>, transform_indices = @transform_3, window_bounds = array<i64: 1, 128>}, {pipeline_mode = #tpu.pipeline_mode<synchronous>, transform_indices = @transform_4, window_bounds = array<i64: 128, 384>}, {pipeline_mode = #tpu.pipeline_mode<synchronous>, transform_indices = @transform_5, window_bounds = array<i64: 1, 384>}, {pipeline_mode = #tpu.pipeline_mode<synchronous>, transform_indices = @transform_6, window_bounds = array<i64: 128, 128>}, {pipeline_mode = #tpu.pipeline_mode<synchronous>, transform_indices = @transform_7, window_bounds = array<i64: 1, 128>}, {pipeline_mode = #tpu.pipeline_mode<synchronous>, transform_indices = @transform_8, window_bounds = array<i64: 1, 128>}, {pipeline_mode = #tpu.pipeline_mode<synchronous>, transform_indices = @transform_9, window_bounds = array<i64: 1, 128>}, {pipeline_mode = #tpu.pipeline_mode<synchronous>, transform_indices = @transform_10, window_bounds = array<i64: 128, 512>}, {pipeline_mode = #tpu.pipeline_mode<synchronous>, transform_indices = @transform_11, window_bounds = array<i64: 1, 512>}, {pipeline_mode = #tpu.pipeline_mode<synchronous>, transform_indices = @transform_12, window_bounds = array<i64: 512, 128>}, {pipeline_mode = #tpu.pipeline_mode<synchronous>, transform_indices = @transform_13, window_bounds = array<i64: 1, 128>}, {pipeline_mode = #tpu.pipeline_mode<synchronous>, transform_indices = @transform_14, window_bounds = array<i64: 128, 128>}, {pipeline_mode = #tpu.pipeline_mode<synchronous>, transform_indices = @transform_15, window_bounds = array<i64: 1, 128>}, {transform_indices = @transform_16, window_bounds = array<i64: 1, 3, 128>}]} {
    %c0 = arith.constant 0 : index
    %c0_0 = arith.constant 0 : index
    %c0_1 = arith.constant 0 : index
    %0 = vector.load %arg1[%c0, %c0_0, %c0_1] : memref<1x8x128xf32, #tpu.memory_space<vmem>>, vector<1x8x128xf32>
    %1 = vector.shape_cast %0 : vector<1x8x128xf32> to vector<8x128xf32>
    %c0_2 = arith.constant 0 : index
    %c0_3 = arith.constant 0 : index
    %2 = vector.load %arg2[%c0_2, %c0_3] : memref<8x128xf32, #tpu.memory_space<vmem>>, vector<8x128xf32>
    %3 = arith.addf %1, %2 : vector<8x128xf32>
    %c0_4 = arith.constant 0 : index
    %c0_5 = arith.constant 0 : index
    %4 = vector.load %arg3[%c0_4, %c0_5] : memref<1x128xf32, #tpu.memory_space<vmem>>, vector<1x128xf32>
    %c0_6 = arith.constant 0 : index
    %c0_7 = arith.constant 0 : index
    %5 = vector.load %arg4[%c0_6, %c0_7] : memref<1x128xf32, #tpu.memory_space<vmem>>, vector<1x128xf32>
    %cst = arith.constant dense<0.000000e+00> : vector<8xf32>
    %6 = vector.multi_reduction <add>, %3, %cst [1] : vector<8x128xf32> to vector<8xf32>
    %7 = vector.shape_cast %6 : vector<8xf32> to vector<8x1xf32>
    %cst_8 = arith.constant 1.280000e+02 : f32
    %8 = vector.broadcast %cst_8 : f32 to vector<8x1xf32>
    %9 = arith.divf %7, %8 : vector<8x1xf32>
    %10 = vector.broadcast %9 : vector<8x1xf32> to vector<8x128xf32>
    %11 = arith.subf %3, %10 : vector<8x128xf32>
    %12 = arith.mulf %11, %11 : vector<8x128xf32>
    %cst_9 = arith.constant dense<0.000000e+00> : vector<8xf32>
    %13 = vector.multi_reduction <add>, %12, %cst_9 [1] : vector<8x128xf32> to vector<8xf32>
    %14 = vector.shape_cast %13 : vector<8xf32> to vector<8x1xf32>
    %cst_10 = arith.constant 1.280000e+02 : f32
    %15 = vector.broadcast %cst_10 : f32 to vector<8x1xf32>
    %16 = arith.divf %14, %15 : vector<8x1xf32>
    %17 = vector.broadcast %9 : vector<8x1xf32> to vector<8x128xf32>
    %18 = arith.subf %3, %17 : vector<8x128xf32>
    %cst_11 = arith.constant 9.99999974E-6 : f32
    %19 = vector.broadcast %cst_11 : f32 to vector<8x1xf32>
    %20 = arith.addf %16, %19 : vector<8x1xf32>
    %21 = math.rsqrt %20 : vector<8x1xf32>
    %22 = vector.broadcast %21 : vector<8x1xf32> to vector<8x128xf32>
    %23 = arith.mulf %18, %22 : vector<8x128xf32>
    %24 = vector.broadcast %4 : vector<1x128xf32> to vector<8x128xf32>
    %25 = arith.mulf %23, %24 : vector<8x128xf32>
    %26 = vector.broadcast %5 : vector<1x128xf32> to vector<8x128xf32>
    %27 = arith.addf %25, %26 : vector<8x128xf32>
    %28 = arith.truncf %27 : vector<8x128xf32> to vector<8x128xbf16>
    %c0_12 = arith.constant 0 : index
    %c0_13 = arith.constant 0 : index
    %29 = vector.load %arg5[%c0_12, %c0_13] : memref<128x384xbf16, #tpu.memory_space<vmem>>, vector<128x384xbf16>
    %cst_14 = arith.constant dense<0.000000e+00> : vector<8x384xf32>
    %30 = tpu.matmul %28, %29, %cst_14 {dimension_numbers = #tpu.dot_dimension_numbers<[1], [0], [0], [1], [0, 0, 1, 1], [], []>} : vector<8x128xbf16>, vector<128x384xbf16>, vector<8x384xf32> -> vector<8x384xf32>
    %c0_15 = arith.constant 0 : index
    %c0_16 = arith.constant 0 : index
    %31 = vector.load %arg6[%c0_15, %c0_16] : memref<1x384xf32, #tpu.memory_space<vmem>>, vector<1x384xf32>
    %32 = vector.broadcast %31 : vector<1x384xf32> to vector<8x384xf32>
    %33 = arith.addf %30, %32 : vector<8x384xf32>
    %34 = vector.extract_strided_slice %33 {offsets = [5, 0], sizes = [3, 128], strides = [1, 1]} : vector<8x384xf32> to vector<3x128xf32>
    %35 = arith.truncf %34 : vector<3x128xf32> to vector<3x128xbf16>
    %36 = vector.extract_strided_slice %33 {offsets = [0, 128], sizes = [8, 128], strides = [1, 1]} : vector<8x384xf32> to vector<8x128xf32>
    %37 = arith.truncf %36 : vector<8x128xf32> to vector<8x128xbf16>
    %38 = vector.extract_strided_slice %33 {offsets = [0, 256], sizes = [8, 128], strides = [1, 1]} : vector<8x384xf32> to vector<8x128xf32>
    %39 = arith.truncf %38 : vector<8x128xf32> to vector<8x128xbf16>
    %40 = tpu.iota {dimensions = array<i32: 0>} : vector<3x8xi32>
    %41 = tpu.iota {dimensions = array<i32: 1>} : vector<3x8xi32>
    %c5_i32 = arith.constant 5 : i32
    %42 = vector.broadcast %c5_i32 : i32 to vector<3x8xi32>
    %43 = arith.cmpi slt, %41, %42 : vector<3x8xi32>
    %c5_i32_17 = arith.constant 5 : i32
    %44 = vector.broadcast %c5_i32_17 : i32 to vector<3x8xi32>
    %45 = arith.addi %40, %44 : vector<3x8xi32>
    %46 = arith.cmpi eq, %41, %45 : vector<3x8xi32>
    %47 = arith.ori %43, %46 : vector<3x8xi1>
    %48 = vector.extract_strided_slice %35 {offsets = [0, 0], sizes = [3, 32], strides = [1, 1]} : vector<3x128xbf16> to vector<3x32xbf16>
    %49 = vector.extract_strided_slice %37 {offsets = [0, 0], sizes = [8, 32], strides = [1, 1]} : vector<8x128xbf16> to vector<8x32xbf16>
    %cst_18 = arith.constant dense<0.000000e+00> : vector<3x8xf32>
    %50 = tpu.matmul %48, %49, %cst_18 {dimension_numbers = #tpu.dot_dimension_numbers<[1], [1], [0], [0], [0, 0, 1, 0], [], []>} : vector<3x32xbf16>, vector<8x32xbf16>, vector<3x8xf32> -> vector<3x8xf32>
    %cst_19 = arith.constant 0.176776692 : f32
    %51 = vector.broadcast %cst_19 : f32 to vector<3x8xf32>
    %52 = arith.mulf %50, %51 : vector<3x8xf32>
    %cst_20 = arith.constant 0xFF800000 : f32
    %53 = vector.broadcast %cst_20 : f32 to vector<3x8xf32>
    %54 = arith.select %47, %52, %53 : vector<3x8xi1>, vector<3x8xf32>
    %cst_21 = arith.constant dense<0xFF800000> : vector<3xf32>
    %55 = vector.multi_reduction <maximumf>, %54, %cst_21 [1] : vector<3x8xf32> to vector<3xf32>
    %56 = vector.shape_cast %55 : vector<3xf32> to vector<3x1xf32>
    %57 = vector.broadcast %56 : vector<3x1xf32> to vector<3x8xf32>
    %58 = arith.subf %54, %57 : vector<3x8xf32>
    %59 = math.exp %58 : vector<3x8xf32>
    %cst_22 = arith.constant dense<0.000000e+00> : vector<3xf32>
    %60 = vector.multi_reduction <add>, %59, %cst_22 [1] : vector<3x8xf32> to vector<3xf32>
    %61 = vector.shape_cast %60 : vector<3xf32> to vector<3x1xf32>
    %62 = arith.truncf %59 : vector<3x8xf32> to vector<3x8xbf16>
    %63 = vector.extract_strided_slice %39 {offsets = [0, 0], sizes = [8, 32], strides = [1, 1]} : vector<8x128xbf16> to vector<8x32xbf16>
    %cst_23 = arith.constant dense<0.000000e+00> : vector<3x32xf32>
    %64 = tpu.matmul %62, %63, %cst_23 {dimension_numbers = #tpu.dot_dimension_numbers<[1], [0], [0], [1], [0, 0, 1, 1], [], []>} : vector<3x8xbf16>, vector<8x32xbf16>, vector<3x32xf32> -> vector<3x32xf32>
    %65 = tpu.reciprocal %61 {approx = true} : vector<3x1xf32> -> vector<3x1xf32>
    %66 = vector.broadcast %65 : vector<3x1xf32> to vector<3x32xf32>
    %67 = arith.mulf %64, %66 : vector<3x32xf32>
    %68 = vector.extract_strided_slice %35 {offsets = [0, 32], sizes = [3, 32], strides = [1, 1]} : vector<3x128xbf16> to vector<3x32xbf16>
    %69 = vector.extract_strided_slice %37 {offsets = [0, 32], sizes = [8, 32], strides = [1, 1]} : vector<8x128xbf16> to vector<8x32xbf16>
    %cst_24 = arith.constant dense<0.000000e+00> : vector<3x8xf32>
    %70 = tpu.matmul %68, %69, %cst_24 {dimension_numbers = #tpu.dot_dimension_numbers<[1], [1], [0], [0], [0, 0, 1, 0], [], []>} : vector<3x32xbf16>, vector<8x32xbf16>, vector<3x8xf32> -> vector<3x8xf32>
    %cst_25 = arith.constant 0.176776692 : f32
    %71 = vector.broadcast %cst_25 : f32 to vector<3x8xf32>
    %72 = arith.mulf %70, %71 : vector<3x8xf32>
    %cst_26 = arith.constant 0xFF800000 : f32
    %73 = vector.broadcast %cst_26 : f32 to vector<3x8xf32>
    %74 = arith.select %47, %72, %73 : vector<3x8xi1>, vector<3x8xf32>
    %cst_27 = arith.constant dense<0xFF800000> : vector<3xf32>
    %75 = vector.multi_reduction <maximumf>, %74, %cst_27 [1] : vector<3x8xf32> to vector<3xf32>
    %76 = vector.shape_cast %75 : vector<3xf32> to vector<3x1xf32>
    %77 = vector.broadcast %76 : vector<3x1xf32> to vector<3x8xf32>
    %78 = arith.subf %74, %77 : vector<3x8xf32>
    %79 = math.exp %78 : vector<3x8xf32>
    %cst_28 = arith.constant dense<0.000000e+00> : vector<3xf32>
    %80 = vector.multi_reduction <add>, %79, %cst_28 [1] : vector<3x8xf32> to vector<3xf32>
    %81 = vector.shape_cast %80 : vector<3xf32> to vector<3x1xf32>
    %82 = arith.truncf %79 : vector<3x8xf32> to vector<3x8xbf16>
    %83 = vector.extract_strided_slice %39 {offsets = [0, 32], sizes = [8, 32], strides = [1, 1]} : vector<8x128xbf16> to vector<8x32xbf16>
    %cst_29 = arith.constant dense<0.000000e+00> : vector<3x32xf32>
    %84 = tpu.matmul %82, %83, %cst_29 {dimension_numbers = #tpu.dot_dimension_numbers<[1], [0], [0], [1], [0, 0, 1, 1], [], []>} : vector<3x8xbf16>, vector<8x32xbf16>, vector<3x32xf32> -> vector<3x32xf32>
    %85 = tpu.reciprocal %81 {approx = true} : vector<3x1xf32> -> vector<3x1xf32>
    %86 = vector.broadcast %85 : vector<3x1xf32> to vector<3x32xf32>
    %87 = arith.mulf %84, %86 : vector<3x32xf32>
    %88 = vector.extract_strided_slice %35 {offsets = [0, 64], sizes = [3, 32], strides = [1, 1]} : vector<3x128xbf16> to vector<3x32xbf16>
    %89 = vector.extract_strided_slice %37 {offsets = [0, 64], sizes = [8, 32], strides = [1, 1]} : vector<8x128xbf16> to vector<8x32xbf16>
    %cst_30 = arith.constant dense<0.000000e+00> : vector<3x8xf32>
    %90 = tpu.matmul %88, %89, %cst_30 {dimension_numbers = #tpu.dot_dimension_numbers<[1], [1], [0], [0], [0, 0, 1, 0], [], []>} : vector<3x32xbf16>, vector<8x32xbf16>, vector<3x8xf32> -> vector<3x8xf32>
    %cst_31 = arith.constant 0.176776692 : f32
    %91 = vector.broadcast %cst_31 : f32 to vector<3x8xf32>
    %92 = arith.mulf %90, %91 : vector<3x8xf32>
    %cst_32 = arith.constant 0xFF800000 : f32
    %93 = vector.broadcast %cst_32 : f32 to vector<3x8xf32>
    %94 = arith.select %47, %92, %93 : vector<3x8xi1>, vector<3x8xf32>
    %cst_33 = arith.constant dense<0xFF800000> : vector<3xf32>
    %95 = vector.multi_reduction <maximumf>, %94, %cst_33 [1] : vector<3x8xf32> to vector<3xf32>
    %96 = vector.shape_cast %95 : vector<3xf32> to vector<3x1xf32>
    %97 = vector.broadcast %96 : vector<3x1xf32> to vector<3x8xf32>
    %98 = arith.subf %94, %97 : vector<3x8xf32>
    %99 = math.exp %98 : vector<3x8xf32>
    %cst_34 = arith.constant dense<0.000000e+00> : vector<3xf32>
    %100 = vector.multi_reduction <add>, %99, %cst_34 [1] : vector<3x8xf32> to vector<3xf32>
    %101 = vector.shape_cast %100 : vector<3xf32> to vector<3x1xf32>
    %102 = arith.truncf %99 : vector<3x8xf32> to vector<3x8xbf16>
    %103 = vector.extract_strided_slice %39 {offsets = [0, 64], sizes = [8, 32], strides = [1, 1]} : vector<8x128xbf16> to vector<8x32xbf16>
    %cst_35 = arith.constant dense<0.000000e+00> : vector<3x32xf32>
    %104 = tpu.matmul %102, %103, %cst_35 {dimension_numbers = #tpu.dot_dimension_numbers<[1], [0], [0], [1], [0, 0, 1, 1], [], []>} : vector<3x8xbf16>, vector<8x32xbf16>, vector<3x32xf32> -> vector<3x32xf32>
    %105 = tpu.reciprocal %101 {approx = true} : vector<3x1xf32> -> vector<3x1xf32>
    %106 = vector.broadcast %105 : vector<3x1xf32> to vector<3x32xf32>
    %107 = arith.mulf %104, %106 : vector<3x32xf32>
    %108 = vector.extract_strided_slice %35 {offsets = [0, 96], sizes = [3, 32], strides = [1, 1]} : vector<3x128xbf16> to vector<3x32xbf16>
    %109 = vector.extract_strided_slice %37 {offsets = [0, 96], sizes = [8, 32], strides = [1, 1]} : vector<8x128xbf16> to vector<8x32xbf16>
    %cst_36 = arith.constant dense<0.000000e+00> : vector<3x8xf32>
    %110 = tpu.matmul %108, %109, %cst_36 {dimension_numbers = #tpu.dot_dimension_numbers<[1], [1], [0], [0], [0, 0, 1, 0], [], []>} : vector<3x32xbf16>, vector<8x32xbf16>, vector<3x8xf32> -> vector<3x8xf32>
    %cst_37 = arith.constant 0.176776692 : f32
    %111 = vector.broadcast %cst_37 : f32 to vector<3x8xf32>
    %112 = arith.mulf %110, %111 : vector<3x8xf32>
    %cst_38 = arith.constant 0xFF800000 : f32
    %113 = vector.broadcast %cst_38 : f32 to vector<3x8xf32>
    %114 = arith.select %47, %112, %113 : vector<3x8xi1>, vector<3x8xf32>
    %cst_39 = arith.constant dense<0xFF800000> : vector<3xf32>
    %115 = vector.multi_reduction <maximumf>, %114, %cst_39 [1] : vector<3x8xf32> to vector<3xf32>
    %116 = vector.shape_cast %115 : vector<3xf32> to vector<3x1xf32>
    %117 = vector.broadcast %116 : vector<3x1xf32> to vector<3x8xf32>
    %118 = arith.subf %114, %117 : vector<3x8xf32>
    %119 = math.exp %118 : vector<3x8xf32>
    %cst_40 = arith.constant dense<0.000000e+00> : vector<3xf32>
    %120 = vector.multi_reduction <add>, %119, %cst_40 [1] : vector<3x8xf32> to vector<3xf32>
    %121 = vector.shape_cast %120 : vector<3xf32> to vector<3x1xf32>
    %122 = arith.truncf %119 : vector<3x8xf32> to vector<3x8xbf16>
    %123 = vector.extract_strided_slice %39 {offsets = [0, 96], sizes = [8, 32], strides = [1, 1]} : vector<8x128xbf16> to vector<8x32xbf16>
    %cst_41 = arith.constant dense<0.000000e+00> : vector<3x32xf32>
    %124 = tpu.matmul %122, %123, %cst_41 {dimension_numbers = #tpu.dot_dimension_numbers<[1], [0], [0], [1], [0, 0, 1, 1], [], []>} : vector<3x8xbf16>, vector<8x32xbf16>, vector<3x32xf32> -> vector<3x32xf32>
    %125 = tpu.reciprocal %121 {approx = true} : vector<3x1xf32> -> vector<3x1xf32>
    %126 = vector.broadcast %125 : vector<3x1xf32> to vector<3x32xf32>
    %127 = arith.mulf %124, %126 : vector<3x32xf32>
    %128 = tpu.concatenate %67, %87, %107, %127 in 1 : vector<3x32xf32>, vector<3x32xf32>, vector<3x32xf32>, vector<3x32xf32> -> vector<3x128xf32>
    %129 = arith.truncf %128 : vector<3x128xf32> to vector<3x128xbf16>
    %c0_42 = arith.constant 0 : index
    %c0_43 = arith.constant 0 : index
    %130 = vector.load %arg7[%c0_42, %c0_43] : memref<128x128xbf16, #tpu.memory_space<vmem>>, vector<128x128xbf16>
    %cst_44 = arith.constant dense<0.000000e+00> : vector<3x128xf32>
    %131 = tpu.matmul %129, %130, %cst_44 {dimension_numbers = #tpu.dot_dimension_numbers<[1], [0], [0], [1], [0, 0, 1, 1], [], []>} : vector<3x128xbf16>, vector<128x128xbf16>, vector<3x128xf32> -> vector<3x128xf32>
    %c0_45 = arith.constant 0 : index
    %c0_46 = arith.constant 0 : index
    %132 = vector.load %arg8[%c0_45, %c0_46] : memref<1x128xf32, #tpu.memory_space<vmem>>, vector<1x128xf32>
    %133 = vector.broadcast %132 : vector<1x128xf32> to vector<3x128xf32>
    %134 = arith.addf %131, %133 : vector<3x128xf32>
    %135 = vector.extract_strided_slice %3 {offsets = [5, 0], sizes = [3, 128], strides = [1, 1]} : vector<8x128xf32> to vector<3x128xf32>
    %136 = arith.addf %135, %134 : vector<3x128xf32>
    %c0_47 = arith.constant 0 : index
    %c0_48 = arith.constant 0 : index
    %137 = vector.load %arg9[%c0_47, %c0_48] : memref<1x128xf32, #tpu.memory_space<vmem>>, vector<1x128xf32>
    %c0_49 = arith.constant 0 : index
    %c0_50 = arith.constant 0 : index
    %138 = vector.load %arg10[%c0_49, %c0_50] : memref<1x128xf32, #tpu.memory_space<vmem>>, vector<1x128xf32>
    %cst_51 = arith.constant dense<0.000000e+00> : vector<3xf32>
    %139 = vector.multi_reduction <add>, %136, %cst_51 [1] : vector<3x128xf32> to vector<3xf32>
    %140 = vector.shape_cast %139 : vector<3xf32> to vector<3x1xf32>
    %cst_52 = arith.constant 1.280000e+02 : f32
    %141 = vector.broadcast %cst_52 : f32 to vector<3x1xf32>
    %142 = arith.divf %140, %141 : vector<3x1xf32>
    %143 = vector.broadcast %142 : vector<3x1xf32> to vector<3x128xf32>
    %144 = arith.subf %136, %143 : vector<3x128xf32>
    %145 = arith.mulf %144, %144 : vector<3x128xf32>
    %cst_53 = arith.constant dense<0.000000e+00> : vector<3xf32>
    %146 = vector.multi_reduction <add>, %145, %cst_53 [1] : vector<3x128xf32> to vector<3xf32>
    %147 = vector.shape_cast %146 : vector<3xf32> to vector<3x1xf32>
    %cst_54 = arith.constant 1.280000e+02 : f32
    %148 = vector.broadcast %cst_54 : f32 to vector<3x1xf32>
    %149 = arith.divf %147, %148 : vector<3x1xf32>
    %150 = vector.broadcast %142 : vector<3x1xf32> to vector<3x128xf32>
    %151 = arith.subf %136, %150 : vector<3x128xf32>
    %cst_55 = arith.constant 9.99999974E-6 : f32
    %152 = vector.broadcast %cst_55 : f32 to vector<3x1xf32>
    %153 = arith.addf %149, %152 : vector<3x1xf32>
    %154 = math.rsqrt %153 : vector<3x1xf32>
    %155 = vector.broadcast %154 : vector<3x1xf32> to vector<3x128xf32>
    %156 = arith.mulf %151, %155 : vector<3x128xf32>
    %157 = vector.broadcast %137 : vector<1x128xf32> to vector<3x128xf32>
    %158 = arith.mulf %156, %157 : vector<3x128xf32>
    %159 = vector.broadcast %138 : vector<1x128xf32> to vector<3x128xf32>
    %160 = arith.addf %158, %159 : vector<3x128xf32>
    %161 = arith.truncf %160 : vector<3x128xf32> to vector<3x128xbf16>
    %c0_56 = arith.constant 0 : index
    %c0_57 = arith.constant 0 : index
    %162 = vector.load %arg11[%c0_56, %c0_57] : memref<128x512xbf16, #tpu.memory_space<vmem>>, vector<128x512xbf16>
    %cst_58 = arith.constant dense<0.000000e+00> : vector<3x512xf32>
    %163 = tpu.matmul %161, %162, %cst_58 {dimension_numbers = #tpu.dot_dimension_numbers<[1], [0], [0], [1], [0, 0, 1, 1], [], []>} : vector<3x128xbf16>, vector<128x512xbf16>, vector<3x512xf32> -> vector<3x512xf32>
    %c0_59 = arith.constant 0 : index
    %c0_60 = arith.constant 0 : index
    %164 = vector.load %arg12[%c0_59, %c0_60] : memref<1x512xf32, #tpu.memory_space<vmem>>, vector<1x512xf32>
    %165 = vector.broadcast %164 : vector<1x512xf32> to vector<3x512xf32>
    %166 = arith.addf %163, %165 : vector<3x512xf32>
    %167 = arith.mulf %166, %166 : vector<3x512xf32>
    %168 = arith.mulf %166, %167 : vector<3x512xf32>
    %cst_61 = arith.constant 4.471500e-02 : f32
    %169 = vector.broadcast %cst_61 : f32 to vector<3x512xf32>
    %170 = arith.mulf %169, %168 : vector<3x512xf32>
    %171 = arith.addf %166, %170 : vector<3x512xf32>
    %cst_62 = arith.constant 0.797884583 : f32
    %172 = vector.broadcast %cst_62 : f32 to vector<3x512xf32>
    %173 = arith.mulf %172, %171 : vector<3x512xf32>
    %174 = math.tanh %173 : vector<3x512xf32>
    %cst_63 = arith.constant 1.000000e+00 : f32
    %175 = vector.broadcast %cst_63 : f32 to vector<3x512xf32>
    %176 = arith.addf %175, %174 : vector<3x512xf32>
    %cst_64 = arith.constant 5.000000e-01 : f32
    %177 = vector.broadcast %cst_64 : f32 to vector<3x512xf32>
    %178 = arith.mulf %177, %176 : vector<3x512xf32>
    %179 = arith.mulf %166, %178 : vector<3x512xf32>
    %180 = arith.truncf %179 : vector<3x512xf32> to vector<3x512xbf16>
    %c0_65 = arith.constant 0 : index
    %c0_66 = arith.constant 0 : index
    %181 = vector.load %arg13[%c0_65, %c0_66] : memref<512x128xbf16, #tpu.memory_space<vmem>>, vector<512x128xbf16>
    %cst_67 = arith.constant dense<0.000000e+00> : vector<3x128xf32>
    %182 = tpu.matmul %180, %181, %cst_67 {dimension_numbers = #tpu.dot_dimension_numbers<[1], [0], [0], [1], [0, 0, 1, 1], [], []>} : vector<3x512xbf16>, vector<512x128xbf16>, vector<3x128xf32> -> vector<3x128xf32>
    %c0_68 = arith.constant 0 : index
    %c0_69 = arith.constant 0 : index
    %183 = vector.load %arg14[%c0_68, %c0_69] : memref<1x128xf32, #tpu.memory_space<vmem>>, vector<1x128xf32>
    %184 = vector.broadcast %183 : vector<1x128xf32> to vector<3x128xf32>
    %185 = arith.addf %182, %184 : vector<3x128xf32>
    %186 = arith.addf %136, %185 : vector<3x128xf32>
    %187 = arith.truncf %186 : vector<3x128xf32> to vector<3x128xbf16>
    %c0_70 = arith.constant 0 : index
    %c0_71 = arith.constant 0 : index
    %188 = vector.load %arg15[%c0_70, %c0_71] : memref<128x128xbf16, #tpu.memory_space<vmem>>, vector<128x128xbf16>
    %cst_72 = arith.constant dense<0.000000e+00> : vector<3x128xf32>
    %189 = tpu.matmul %187, %188, %cst_72 {dimension_numbers = #tpu.dot_dimension_numbers<[1], [0], [0], [1], [0, 0, 1, 1], [], []>} : vector<3x128xbf16>, vector<128x128xbf16>, vector<3x128xf32> -> vector<3x128xf32>
    %c0_73 = arith.constant 0 : index
    %c0_74 = arith.constant 0 : index
    %190 = vector.load %arg16[%c0_73, %c0_74] : memref<1x128xf32, #tpu.memory_space<vmem>>, vector<1x128xf32>
    %191 = vector.broadcast %190 : vector<1x128xf32> to vector<3x128xf32>
    %192 = arith.addf %189, %191 : vector<3x128xf32>
    %193 = vector.shape_cast %192 : vector<3x128xf32> to vector<1x3x128xf32>
    %c0_75 = arith.constant 0 : index
    %c0_76 = arith.constant 0 : index
    %c0_77 = arith.constant 0 : index
    %194 = vector.load %arg17[%c0_75, %c0_76, %c0_77] : memref<1x3x128xf32, #tpu.memory_space<vmem>>, vector<1x3x128xf32>
    tpu.vector_store %arg17[%c0_75, %c0_76, %c0_77], %193 {strides = array<i32>} : memref<1x3x128xf32, #tpu.memory_space<vmem>>, vector<1x3x128xf32>,
    return
  }
  func.func @transform_0(%arg0: i32) -> (i32, i32, i32) {
    %c0_i32 = arith.constant 0 : i32
    %c0_i32_0 = arith.constant 0 : i32
    %c0_i32_1 = arith.constant 0 : i32
    return %arg0, %c0_i32, %c0_i32_0 : i32, i32, i32
  }
  func.func @transform_1(%arg0: i32) -> (i32, i32) {
    %c0_i32 = arith.constant 0 : i32
    %c0_i32_0 = arith.constant 0 : i32
    %c0_i32_1 = arith.constant 0 : i32
    return %c0_i32, %c0_i32_0 : i32, i32
  }
  func.func @transform_2(%arg0: i32) -> (i32, i32) {
    %c0_i32 = arith.constant 0 : i32
    %c0_i32_0 = arith.constant 0 : i32
    %c0_i32_1 = arith.constant 0 : i32
    return %c0_i32, %c0_i32_0 : i32, i32
  }
  func.func @transform_3(%arg0: i32) -> (i32, i32) {
    %c0_i32 = arith.constant 0 : i32
    %c0_i32_0 = arith.constant 0 : i32
    %c0_i32_1 = arith.constant 0 : i32
    return %c0_i32, %c0_i32_0 : i32, i32
  }
  func.func @transform_4(%arg0: i32) -> (i32, i32) {
    %c0_i32 = arith.constant 0 : i32
    %c0_i32_0 = arith.constant 0 : i32
    %c0_i32_1 = arith.constant 0 : i32
    return %c0_i32, %c0_i32_0 : i32, i32
  }
  func.func @transform_5(%arg0: i32) -> (i32, i32) {
    %c0_i32 = arith.constant 0 : i32
    %c0_i32_0 = arith.constant 0 : i32
    %c0_i32_1 = arith.constant 0 : i32
    return %c0_i32, %c0_i32_0 : i32, i32
  }
  func.func @transform_6(%arg0: i32) -> (i32, i32) {
    %c0_i32 = arith.constant 0 : i32
    %c0_i32_0 = arith.constant 0 : i32
    %c0_i32_1 = arith.constant 0 : i32
    return %c0_i32, %c0_i32_0 : i32, i32
  }
  func.func @transform_7(%arg0: i32) -> (i32, i32) {
    %c0_i32 = arith.constant 0 : i32
    %c0_i32_0 = arith.constant 0 : i32
    %c0_i32_1 = arith.constant 0 : i32
    return %c0_i32, %c0_i32_0 : i32, i32
  }
  func.func @transform_8(%arg0: i32) -> (i32, i32) {
    %c0_i32 = arith.constant 0 : i32
    %c0_i32_0 = arith.constant 0 : i32
    %c0_i32_1 = arith.constant 0 : i32
    return %c0_i32, %c0_i32_0 : i32, i32
  }
  func.func @transform_9(%arg0: i32) -> (i32, i32) {
    %c0_i32 = arith.constant 0 : i32
    %c0_i32_0 = arith.constant 0 : i32
    %c0_i32_1 = arith.constant 0 : i32
    return %c0_i32, %c0_i32_0 : i32, i32
  }
  func.func @transform_10(%arg0: i32) -> (i32, i32) {
    %c0_i32 = arith.constant 0 : i32
    %c0_i32_0 = arith.constant 0 : i32
    %c0_i32_1 = arith.constant 0 : i32
    return %c0_i32, %c0_i32_0 : i32, i32
  }
  func.func @transform_11(%arg0: i32) -> (i32, i32) {
    %c0_i32 = arith.constant 0 : i32
    %c0_i32_0 = arith.constant 0 : i32
    %c0_i32_1 = arith.constant 0 : i32
    return %c0_i32, %c0_i32_0 : i32, i32
  }
  func.func @transform_12(%arg0: i32) -> (i32, i32) {
    %c0_i32 = arith.constant 0 : i32
    %c0_i32_0 = arith.constant 0 : i32
    %c0_i32_1 = arith.constant 0 : i32
    return %c0_i32, %c0_i32_0 : i32, i32
  }
  func.func @transform_13(%arg0: i32) -> (i32, i32) {
    %c0_i32 = arith.constant 0 : i32
    %c0_i32_0 = arith.constant 0 : i32
    %c0_i32_1 = arith.constant 0 : i32
    return %c0_i32, %c0_i32_0 : i32, i32
  }
  func.func @transform_14(%arg0: i32) -> (i32, i32) {
    %c0_i32 = arith.constant 0 : i32
    %c0_i32_0 = arith.constant 0 : i32
    %c0_i32_1 = arith.constant 0 : i32
    return %c0_i32, %c0_i32_0 : i32, i32
  }
  func.func @transform_15(%arg0: i32) -> (i32, i32) {
    %c0_i32 = arith.constant 0 : i32
    %c0_i32_0 = arith.constant 0 : i32
    %c0_i32_1 = arith.constant 0 : i32
    return %c0_i32, %c0_i32_0 : i32, i32
  }
  func.func @transform_16(%arg0: i32) -> (i32, i32, i32) {
    %c0_i32 = arith.constant 0 : i32
    %c0_i32_0 = arith.constant 0 : i32
    %c0_i32_1 = arith.constant 0 : i32
    return %arg0, %c0_i32, %c0_i32_0 : i32, i32, i32
  }
}

</mosaic_0001>

<bundles_post_ra>
// kernel: tpu_custom_call.1
= control target key start
LH: loop header
LB: loop body
LE: loop exit
PB: predicated region body
PF: predicated region fallthrough
CT: control target
= control target key end

     0   :  { %s3969_s0 = inlined_call_operand.hbm [shape: f32[2,8,128], index: 0, kind: input, shape index: {}]   ;;  %s3970_s1 = inlined_call_operand.hbm [shape: f32[8,128], index: 1, kind: input, shape index: {}]   ;;  %s3971_s2 = inlined_call_operand.hbm [shape: f32[1,128], index: 2, kind: input, shape index: {}]   ;;  %s3972_s3 = inlined_call_operand.vmem [shape: f32[1,128], index: 3, kind: input, shape index: {}]   ;;  %s3973_s4 = inlined_call_operand.hbm [shape: bf16[128,384], index: 4, kind: input, shape index: {}]   ;;  %s3974_s5 = inlined_call_operand.vmem [shape: f32[1,384], index: 5, kind: input, shape index: {}]   ;;  %s3975_s6 = inlined_call_operand.hbm [shape: bf16[128,128], index: 6, kind: input, shape index: {}]   ;;  %s3976_s7 = inlined_call_operand.vmem [shape: f32[1,128], index: 7, kind: input, shape index: {}]   ;;  %s3977_s8 = inlined_call_operand.vmem [shape: f32[1,128], index: 8, kind: input, shape index: {}]   ;;  %s3978_s9 = inlined_call_operand.vmem [shape: f32[1,128], index: 9, kind: input, shape index: {}]   ;;  %s3979_s10 = inlined_call_operand.hbm [shape: bf16[128,512], index: 10, kind: input, shape index: {}]   ;;  %s3980_s11 = inlined_call_operand.vmem [shape: f32[1,512], index: 11, kind: input, shape index: {}]   ;;  %s3981_s12 = inlined_call_operand.hbm [shape: bf16[512,128], index: 12, kind: input, shape index: {}]   ;;  %s3982_s13 = inlined_call_operand.vmem [shape: f32[1,128], index: 13, kind: input, shape index: {}]   ;;  %s3983_s14 = inlined_call_operand.hbm [shape: bf16[128,128], index: 14, kind: input, shape index: {}]   ;;  %s3984_s15 = inlined_call_operand.vmem [shape: f32[1,128], index: 15, kind: input, shape index: {}]   ;;  %s3985_s16 = inlined_call_operand.vmem [shape: f32[2,3,128], index: 16, kind: output, shape index: {}]  }
   0x1   :  { %3989 = sst [smem:[#allocation20_spill]] %s3969_s0 }
   0x2   :  { %3990 = sst [smem:[#allocation21_spill]] %s3970_s1 }
   0x3   :  { %3991 = sst [smem:[#allocation22_spill]] %s3973_s4 }
   0x4   :  { %3992 = sst [smem:[#allocation23_spill]] %s3976_s7 }
   0x5   :  { %3993 = sst [smem:[#allocation24_spill]] %s3977_s8 }
   0x6   :  { %3994 = sst [smem:[#allocation25_spill]] %s3978_s9 }
   0x7   :  { %3995 = sst [smem:[#allocation26_spill]] %s3980_s11 }
   0x8   :  { %3996 = sst [smem:[#allocation27_spill]] %s3982_s13 }
   0x9   :  { %3997 = sst [smem:[#allocation28_spill]] %s3984_s15 }
   0xa   :  { %3998 = sst [smem:[#allocation29_spill]] %s3985_s16 }
   0xb   :  { %21 = vsyncpa [#allocation3], 0 }
   0xc   :  { %23 = vsyncpa [#allocation3 + $0x1], 0 }
   0xd   :  { %24 = vsyncpa [#allocation5], 0 }
   0xe   :  { %25 = vsyncpa [#allocation8], 0 }
   0xf   :  { %26 = vsyncpa [#allocation11], 0 }
  0x10   :  { %27 = vsyncpa [#allocation14], 0  ;;  %s3502_s21 = smov 0   ;;  %s3504_s22 = smov 0  }
  0x11   :  { %s3506_s23 = smov 0   ;;  %s3508_s24 = smov 0  }
  0x12 LB: > { %s3397_s25 = smov [#allocation4]   ;;  %s3523_s27 = sadd.s32 4294967295, %s3395_s24   ;;  %s3395_s24 = sphi %s3508_s24, %s4029_s24   ;;  %s3391_s23 = sphi %s3506_s23, %s4028_s23   ;;  %s3387_s22 = sphi %s3504_s22, %s4027_s22   ;;  %s3383_s21 = sphi %s3502_s21, %s4026_s21  }
  0x13   : > { %s418_s26 = sshll.u32 %s3397_s25, 4  ;;  %p2504_p0 = scmp.ge.s32.totalorder %s3395_s24, 1  ;;  %s419_s26 = int_to_ptr.vmem [resolvable:$true] %s418_s26 }
  0x14   : > { %p3987_p1 = scmp.eq.s32.totalorder %s3523_s27, 0  ;;  %p405_p2 = scmp.lt.s32.totalorder %s3395_s24, 3 }
  0x15   : > { %s3398_s29 = smov [#allocation7]   ;;  %s3399_s17 = smov [#allocation10]  }
  0x16   : > { %p3528_p3 = pnand %p2504_p0, %p405_p2  ;;  %s442_s30 = sshll.u32 %s3398_s29, 4  ;;  %s3534_s30 = int_to_ptr.vmem [resolvable:$true] %s442_s30 }
  0x17   : > { %s480_s18 = sshll.u32 %s3399_s17, 4  ;;  %s4001_s1 = sld [smem:[#allocation21_spill]]  ;;  %s3542_s18 = int_to_ptr.vmem [resolvable:$true] %s480_s18 }
  0x18   : > { %s3999_s28 = scalar_select %p3528_p3, 1, 0 }
  0x19   : > { %p2871_p4 = pneg %p3528_p3 }
  0x1b   : > { %p3538_p5 = pnand %p2871_p4, %p3987_p1 }
  0x1d   : > { %s3119_s25 = scalar_lea.hbm %s4001_s1, 128  ;;  %p3552_p7 = pneg %p3538_p5 }
  0x1e   : > { %p3120_p6 = scmp.ne.s32.totalorder %s4001_s1, %s3119_s25  ;;  %p3126_p10 = scmp.lt.u32.totalorder %s3119_s25, %s4001_s1 }
  0x20   : > { %p3122_p8 = pnand %p3552_p7, %p3120_p6 }
  0x22   : > { %p3123_p9 = pneg %p3122_p8 }
  0x24   : > { %p3128_p11 = pnand %p3126_p10, %p3123_p9 }
  0x26   : > { %3131 = shalt.err (!%p3128_p11)
}
  0x27   : > { %s3132_s19 = scalar_lea.vmem %s419_s26, 128  ;;  %p3140_p2 = scmp.lt.s32.totalorder %s419_s26, %s419_s26 }
  0x28   : > { %p3133_p12 = scmp.ne.s32.totalorder %s419_s26, %s3132_s19  ;;  %p3141_p4 = scmp.lt.s32.totalorder %s3132_s19, %s3132_s19 }
  0x2a   : > { %p3135_p13 = pnand %p3133_p12, %p3552_p7  ;;  %p3142_p1 = por %p3141_p4, %p3140_p2 }
  0x2c   : > { %p3136_p0 = pneg %p3135_p13 }
  0x2e   : > { %p3143_p3 = pnand %p3142_p1, %p3136_p0 }
  0x30   : > { %3146 = shalt.err (!%p3143_p3)
}
  0x31   : > { %2874 = dma.hbm_to_vmem [thread:$0]  (!%p3538_p5), %s4001_s1, 128, %s419_s26, [#allocation5]  }
  0x32   : > { %s4003_s4 = sld [smem:[#allocation22_spill]] }
  0x38   : > { %s3147_s25 = scalar_lea.hbm %s4003_s4, 3072 }
  0x39   : > { %p3148_p6 = scmp.ne.s32.totalorder %s4003_s4, %s3147_s25  ;;  %p3154_p1 = scmp.lt.u32.totalorder %s3147_s25, %s4003_s4 }
  0x3b   : > { %p3150_p8 = pnand %p3148_p6, %p3552_p7 }
  0x3d   : > { %p3151_p9 = pneg %p3150_p8 }
  0x3f   : > { %p3156_p3 = pnand %p3154_p1, %p3151_p9 }
  0x41   : > { %3159 = shalt.err (!%p3156_p3)
}
  0x42   : > { %s3160_s26 = scalar_lea.vmem %s3534_s30, 3072  ;;  %p3168_p13 = scmp.lt.s32.totalorder %s3534_s30, %s3534_s30 }
  0x43   : > { %p3161_p10 = scmp.ne.s32.totalorder %s3534_s30, %s3160_s26  ;;  %p3169_p0 = scmp.lt.s32.totalorder %s3160_s26, %s3160_s26 }
  0x45   : > { %p3163_p11 = pnand %p3161_p10, %p3552_p7  ;;  %p3170_p2 = por %p3169_p0, %p3168_p13 }
  0x47   : > { %p3164_p12 = pneg %p3163_p11 }
  0x49   : > { %p3171_p4 = pnand %p3170_p2, %p3164_p12 }
  0x4b   : > { %3174 = shalt.err (!%p3171_p4)
}
  0x4c   : > { %s3400_s11 = smov 192   ;;  %s3401_s9 = smov 12  }
  0x4d   : > { %2880 = dma.hbm_to_vmem [thread:$0]  (!%p3538_p5), %s4003_s4, 3072, %s3534_s30, [#allocation8], %s3400_s11, %s3400_s11, %s3401_s9  }
  0x4e   : > { %s3175_s25 = scalar_lea.hbm %s3979_s10, 4096 }
  0x4f   : > { %p3176_p6 = scmp.ne.s32.totalorder %s3979_s10, %s3175_s25  ;;  %p3182_p1 = scmp.lt.u32.totalorder %s3175_s25, %s3979_s10 }
  0x51   : > { %p3178_p8 = pnand %p3176_p6, %p3552_p7 }
  0x53   : > { %p3179_p9 = pneg %p3178_p8 }
  0x55   : > { %p3184_p3 = pnand %p3182_p1, %p3179_p9 }
  0x57   : > { %3187 = shalt.err (!%p3184_p3)
}
  0x58   : > { %s3188_s30 = scalar_lea.vmem %s3542_s18, 4096  ;;  %p3196_p13 = scmp.lt.s32.totalorder %s3542_s18, %s3542_s18 }
  0x59   : > { %p3189_p10 = scmp.ne.s32.totalorder %s3542_s18, %s3188_s30  ;;  %p3197_p0 = scmp.lt.s32.totalorder %s3188_s30, %s3188_s30 }
  0x5b   : > { %p3191_p11 = pnand %p3189_p10, %p3552_p7  ;;  %p3198_p2 = por %p3197_p0, %p3196_p13 }
  0x5d   : > { %p3192_p12 = pneg %p3191_p11 }
  0x5f   : > { %p3199_p4 = pnand %p3198_p2, %p3192_p12 }
  0x61   : > { %3202 = shalt.err (!%p3199_p4)
}
  0x62   : > { %s3402_s11 = smov 256   ;;  %s3403_s1 = smov 16  }
  0x63   : > { %2886 = dma.hbm_to_vmem [thread:$0]  (!%p3538_p5), %s3979_s10, 4096, %s3542_s18, [#allocation11], %s3402_s11, %s3402_s11, %s3403_s1  }
  0x64   : > { %s3404_s16 = smov [#allocation6]   ;;  %s3405_s20 = smov [#allocation9]  }
  0x65   : > { %s429_s13 = sshll.u32 %s3404_s16, 4  ;;  %s458_s25 = sshll.u32 %s3405_s20, 4  ;;  %s430_s13 = int_to_ptr.vmem [resolvable:$true] %s429_s13  ;;  %s459_s25 = int_to_ptr.vmem [resolvable:$true] %s458_s25 }
  0x66   : > { %s3203_s26 = scalar_lea.hbm %s3971_s2, 16 }
  0x67   : > { %p3204_p6 = scmp.ne.s32.totalorder %s3971_s2, %s3203_s26  ;;  %p3210_p1 = scmp.lt.u32.totalorder %s3203_s26, %s3971_s2 }
  0x69   : > { %p3206_p8 = pnand %p3204_p6, %p3552_p7 }
  0x6b   : > { %p3207_p9 = pneg %p3206_p8 }
  0x6d   : > { %p3212_p3 = pnand %p3210_p1, %p3207_p9 }
  0x6f   : > { %3215 = shalt.err (!%p3212_p3)
}
  0x70   : > { %s3216_s18 = scalar_lea.vmem %s430_s13, 16  ;;  %s3223_s11 = scalar_lea.vmem %s430_s13, 32 }
  0x71   : > { %p3217_p10 = scmp.ne.s32.totalorder %s430_s13, %s3216_s18  ;;  %p3224_p13 = scmp.lt.s32.totalorder %s430_s13, %s430_s13 }
  0x72   : > { %p3225_p0 = scmp.lt.s32.totalorder %s3223_s11, %s3216_s18 }
  0x73   : > { %p3219_p11 = pnand %p3217_p10, %p3552_p7 }
  0x74   : > { %p3226_p2 = por %p3225_p0, %p3224_p13 }
  0x75   : > { %p3220_p12 = pneg %p3219_p11 }
  0x77   : > { %p3227_p4 = pnand %p3226_p2, %p3220_p12 }
  0x79   : > { %3230 = shalt.err (!%p3227_p4)
}
  0x7a   : > { %2877 = dma.hbm_to_vmem [thread:$0]  (!%p3538_p5), %s3971_s2, 16, %s430_s13, [#allocation5]  }
  0x7b   : > { %s3231_s9 = scalar_lea.hbm %s3975_s6, 1024 }
  0x7c   : > { %p3232_p6 = scmp.ne.s32.totalorder %s3975_s6, %s3231_s9  ;;  %p3238_p1 = scmp.lt.u32.totalorder %s3231_s9, %s3975_s6 }
  0x7e   : > { %p3234_p8 = pnand %p3232_p6, %p3552_p7 }
  0x80   : > { %p3235_p9 = pneg %p3234_p8 }
  0x82   : > { %p3240_p3 = pnand %p3238_p1, %p3235_p9 }
  0x84   : > { %3243 = shalt.err (!%p3240_p3)
}
  0x85   : > { %s3244_s19 = scalar_lea.vmem %s459_s25, 1024  ;;  %p3252_p13 = scmp.lt.s32.totalorder %s459_s25, %s459_s25 }
  0x86   : > { %p3245_p10 = scmp.ne.s32.totalorder %s459_s25, %s3244_s19  ;;  %p3253_p0 = scmp.lt.s32.totalorder %s3244_s19, %s3244_s19 }
  0x88   : > { %p3247_p11 = pnand %p3245_p10, %p3552_p7  ;;  %p3254_p2 = por %p3253_p0, %p3252_p13 }
  0x8a   : > { %p3248_p12 = pneg %p3247_p11 }
  0x8c   : > { %p3255_p4 = pnand %p3254_p2, %p3248_p12 }
  0x8e   : > { %3258 = shalt.err (!%p3255_p4)
}
  0x8f   : > { %s3406_s13 = smov 64   ;;  %s3407_s26 = smov 4  }
  0x90   : > { %2883 = dma.hbm_to_vmem [thread:$0]  (!%p3538_p5), %s3975_s6, 1024, %s459_s25, [#allocation8], %s3406_s13, %s3406_s13, %s3407_s26  }
  0x91   : > { %s3408_s11 = smov [#allocation12]   ;;  %s3409_s1 = smov [#allocation13]  }
  0x92   : > { %s496_s4 = sshll.u32 %s3408_s11, 4  ;;  %s512_s7 = sshll.u32 %s3409_s1, 4  ;;  %s497_s4 = int_to_ptr.vmem [resolvable:$true] %s496_s4  ;;  %s513_s7 = int_to_ptr.vmem [resolvable:$true] %s512_s7 }
  0x93   : > { %s3259_s15 = scalar_lea.hbm %s3981_s12, 4096 }
  0x94   : > { %p3260_p6 = scmp.ne.s32.totalorder %s3981_s12, %s3259_s15  ;;  %p3266_p1 = scmp.lt.u32.totalorder %s3259_s15, %s3981_s12 }
  0x96   : > { %p3262_p8 = pnand %p3260_p6, %p3552_p7 }
  0x98   : > { %p3263_p9 = pneg %p3262_p8 }
  0x9a   : > { %p3268_p3 = pnand %p3266_p1, %p3263_p9 }
  0x9c   : > { %3271 = shalt.err (!%p3268_p3)
}
  0x9d   : > { %s3272_s25 = scalar_lea.vmem %s497_s4, 4096  ;;  %p3280_p13 = scmp.lt.s32.totalorder %s497_s4, %s497_s4 }
  0x9e   : > { %p3273_p10 = scmp.ne.s32.totalorder %s497_s4, %s3272_s25  ;;  %p3281_p0 = scmp.lt.s32.totalorder %s3272_s25, %s3272_s25 }
  0xa0   : > { %p3275_p11 = pnand %p3273_p10, %p3552_p7  ;;  %p3282_p2 = por %p3281_p0, %p3280_p13 }
  0xa2   : > { %p3276_p12 = pneg %p3275_p11 }
  0xa4   : > { %p3283_p4 = pnand %p3282_p2, %p3276_p12 }
  0xa6   : > { %3286 = shalt.err (!%p3283_p4)
}
  0xa7   : > { %2889 = dma.hbm_to_vmem [thread:$0]  (!%p3538_p5), %s3981_s12, 4096, %s497_s4, [#allocation11], %s3406_s13, %s3406_s13, %s3407_s26  }
  0xa8   : > { %s3287_s8 = scalar_lea.hbm %s3983_s14, 1024 }
  0xa9   : > { %p3288_p6 = scmp.ne.s32.totalorder %s3983_s14, %s3287_s8  ;;  %p3294_p1 = scmp.lt.u32.totalorder %s3287_s8, %s3983_s14 }
  0xab   : > { %p3290_p8 = pnand %p3288_p6, %p3552_p7 }
  0xad   : > { %p3291_p9 = pneg %p3290_p8 }
  0xaf   : > { %p3296_p3 = pnand %p3294_p1, %p3291_p9 }
  0xb1   : > { %3299 = shalt.err (!%p3296_p3)
}
  0xb2   : > { %s3300_s17 = scalar_lea.vmem %s513_s7, 1024  ;;  %p3308_p13 = scmp.lt.s32.totalorder %s513_s7, %s513_s7 }
  0xb3   : > { %p3301_p10 = scmp.ne.s32.totalorder %s513_s7, %s3300_s17  ;;  %p3309_p0 = scmp.lt.s32.totalorder %s3300_s17, %s3300_s17 }
  0xb5   : > { %p3303_p11 = pnand %p3301_p10, %p3552_p7  ;;  %p3310_p2 = por %p3309_p0, %p3308_p13 }
  0xb7   : > { %p3304_p12 = pneg %p3303_p11 }
  0xb9   : > { %p3311_p4 = pnand %p3310_p2, %p3304_p12 }
  0xbb   : > { %3314 = shalt.err (!%p3311_p4)
}
  0xbc   : > { %2892 = dma.hbm_to_vmem [thread:$0]  (!%p3538_p5), %s3983_s14, 1024, %s513_s7, [#allocation14], %s3406_s13, %s3406_s13, %s3407_s26  }
  0xbd   : > { %s3696_s0 = sadd.s32 1, %s3395_s24   ;;  %s40_s25 = sadd.s32 1, %s3391_s23 }
  0xbe   : > { %s37_s29 = ssub.s32 %s3395_s24, %s3696_s0  ;;  %p47_p6 = scmp.ne.s32.totalorder %s3391_s23, %s3387_s22 }
  0xbf   : > { %p38_p7 = scmp.eq.s32.totalorder %s37_s29, 0  ;;  %p48_p8 = scmp.eq.s32.totalorder %s3395_s24, 0 }
  0xc0   : > { %p53_p9 = scmp.ne.s32.totalorder %s3387_s22, %s3383_s21  ;;  %p4004_p3 = scmp.eq.s32.totalorder %s3523_s27, 0 }
  0xc1   : > { %s3707_s30 = scalar_select %p38_p7, %s3391_s23, %s40_s25  }
  0xc2   : > { %p49_p1 = por %p48_p8, %p47_p6  ;;  %p3711_p10 = por %p4004_p3, %p53_p9 }
  0xc3   : > { %p2904_p11 = scmp.lt.s32.totalorder %s3395_s24, 2  ;;  %s529_s11 = sand.u32 1, %s3391_s23  }
  0xc4   : > { %s2513_s13 = sshll.u32 %s529_s11, 3  ;;  %s2514_s26 = sshll.u32 %s3395_s24, 7 }
  0xc5   : > { %s4006_s8 = sld [smem:[#allocation20_spill]]  ;;  %s533_s21 = scalar_lea.vmem [#allocation2], %s2513_s13 }
  0xc6   : > { %s540_s15 = sshll.u32 %s533_s21, 4  ;;  %p3725_p5 = pnand %p2904_p11, %p49_p1  ;;  %s3723_s15 = int_to_ptr.vmem [resolvable:$true] %s540_s15 }
  0xc7   : > { %s530_s24 = scalar_lea.sflag [#allocation3], %s529_s11 }
  0xc8   : > { %p3317_p13 = pneg %p3725_p5 }
  0xcb   : > { %s3721_s9 = scalar_lea.hbm %s4006_s8, %s2514_s26  ;;  %s3320_s19 = scalar_lea.hbm %s4006_s8, 256 }
  0xcc   : > { %s3315_s20 = scalar_lea.hbm %s3721_s9, 128  ;;  %p3321_p4 = scmp.lt.u32.totalorder %s3721_s9, %s4006_s8 }
  0xcd   : > { %p3316_p12 = scmp.ne.s32.totalorder %s3721_s9, %s3315_s20  ;;  %p3322_p7 = scmp.lt.u32.totalorder %s3320_s19, %s3315_s20 }
  0xce   : > { %p3324_p8 = scmp.lt.u32.totalorder %s3315_s20, %s3721_s9 }
  0xcf   : > { %p3318_p0 = pnand %p3317_p13, %p3316_p12  ;;  %p3323_p6 = por %p3322_p7, %p3321_p4 }
  0xd1   : > { %p3319_p2 = pneg %p3318_p0  ;;  %p3325_p9 = por %p3324_p8, %p3323_p6 }
  0xd3   : > { %p3326_p1 = pnand %p3325_p9, %p3319_p2 }
  0xd5   : > { %3329 = shalt.err (!%p3326_p1)
}
  0xd6   : > { %s3330_s11 = scalar_lea.vmem %s3723_s15, 128  ;;  %s3410_s13 = smov [#allocation2]  }
  0xd7   : > { %p3331_p3 = scmp.ne.s32.totalorder %s3723_s15, %s3330_s11  ;;  %s3335_s26 = sshll.u32 %s3410_s13, 4  ;;  %s3336_s26 = int_to_ptr.vmem [resolvable:$false] %s3335_s26 }
  0xd8   : > { %s3337_s7 = scalar_lea.vmem %s3336_s26, 256  ;;  %p3338_p0 = scmp.lt.s32.totalorder %s3723_s15, %s3336_s26 }
  0xd9   : > { %p3333_p11 = pnand %p3331_p3, %p3317_p13  ;;  %p3339_p4 = scmp.lt.s32.totalorder %s3337_s7, %s3330_s11 }
  0xdb   : > { %p3334_p12 = pneg %p3333_p11  ;;  %p3340_p7 = por %p3339_p4, %p3338_p0 }
  0xdd   : > { %p3341_p6 = pnand %p3340_p7, %p3334_p12 }
  0xdf   : > { %3344 = shalt.err (!%p3341_p6)
}
  0xe0   : > { %2896 = dma.hbm_to_vmem [thread:$0]  (!%p3725_p5), %s3721_s9, 128, %s3723_s15, %s530_s24  }
  0xe1   : > { %p4008_p2 = scmp.ne.s32.totalorder %s3999_s28, 0 }
  0xe2   : > { %s551_s1 = sand.u32 (!%p4008_p2), 1, %s3387_s22  }
  0xe3   : > { %549 = sbr.rel (%p4008_p2) target bundleno = 2859 (0xb2b), region = 84  ;;  %s2516_s21 = sshll.u32 (!%p4008_p2), %s551_s1, 3 }
  0xe4   : > { %s552_s20 = scalar_lea.sflag (!%p4008_p2), [#allocation3], %s551_s1  ;;  %s555_s17 = scalar_lea.vmem (!%p4008_p2), [#allocation2], %s2516_s21 }
  0xea   : > { %3362 = dma.done.wait (%p3711_p10), %s552_s20, 128  }
  0xeb   : > { %3364 = vsyncadd (%p3711_p10), %s552_s20, 4294967168  ;;  %p4009_p13 = scmp.eq.s32.totalorder %s3523_s27, 0 }
  0xed   : > { %3366 = dma.done.wait (%p4009_p13), [#allocation5], 144   ;;  %p4010_p8 = pmov %p4009_p13 }
  0xef   : > { %3368 = vsyncadd (%p4010_p8), [#allocation5], 4294967152  ;;  %p4011_p5 = pmov %p4010_p8 }
  0xf1   : > { %3370 = dma.done.wait (%p4011_p5), [#allocation8], 4096   ;;  %p4012_p9 = pmov %p4011_p5 }
  0xf2   : > { %p4013_p1 = pmov %p4011_p5 }
  0xf3   : > { %3372 = vsyncadd (%p4012_p9), [#allocation8], 4294963200 }
  0xf4   : > { %3374 = dma.done.wait (%p4013_p1), [#allocation11], 8192   ;;  %p4014_p3 = pmov %p4013_p1 }
  0xf5   : > { %p4015_p10 = pmov %p4013_p1 }
  0xf6   : > { %3376 = vsyncadd (%p4014_p3), [#allocation11], 4294959104 }
  0xf7   : > { %3378 = dma.done.wait (%p4015_p10), [#allocation14], 1024   ;;  %p4016_p11 = pmov %p4013_p1 }
  0xf8   : > { %v636_v0 = vld [vmem:[%s555_s17] sm:$0xff]  ;;  %v637_v1 = vld [vmem:[#allocation4] sm:$0xff]  ;;  %v3411_v5 = vmov 0.0   ;;  %v3412_v27 = vmov 0   ;;  %vm3413_vm0 = vmmov 0   ;;  %v702_v43 = vlaneseq  ;;  %s3414_s16 = smov 64  }
  0xf9   : > { %3380 = vsyncadd (%p4016_p11), [#allocation14], 4294966272  ;;  %v3777_v2 = vadd.f32 %v637_v1, %v636_v0  ;;  %v2963_v3 = vld [vmem:[#allocation7 + $0x4] ss:$12 sps:$4 sm:$0xff]   ;;  %v2965_v4 = vld [vmem:[#allocation7] ss:$12 sps:$4 sm:$0xff]   ;;  %2733 = vmatprep.subr.bf16.mxu1 %v3411_v5  ;;  %877 = vmatprep.mubr.bf16.mxu0 %v3412_v27 }
  0xfa   : > { %v2966_v6 = vld [vmem:[#allocation7 + $0x8] ss:$12 sps:$4 sm:$0xff]   ;;  %v2969_v8 = vld [vmem:[#allocation7 + $0x18] ss:$12 sps:$4 sm:$0xff]   ;;  %845 = vmatprep.subr.bf16.mxu0 %v2963_v3  ;;  %v2970_v9 = vld [vmem:[#allocation7 + $0x20] ss:$12 sps:$4 sm:$0xff]   ;;  %2749 = vmatprep.mubr.msk.bf16.mxu1 %vm3413_vm0, %v3411_v5 }
  0xfb   : > { %641 = vadd.xlane.f32.xlu0 %v3777_v2  ;;  %v2967_v7 = vld [vmem:[#allocation7 + $0x1c] ss:$12 sps:$4 sm:$0xff]   ;;  %v2971_v10 = vld [vmem:[#allocation7 + $0x34] ss:$12 sps:$4 sm:$0xff]   ;;  %846 = vmatpush1.bf16.msra.mxu0 %v2965_v4  ;;  %v2974_v16 = vld [vmem:[#allocation7 + $0x38] ss:$12 sps:$4 sm:$0xff]  }
  0xfc   : > { %2734 = vmatpush3.bf16.msra.mxu1 %v2966_v6  ;;  %847 = vmatprep.subr.bf16.mxu0 %v2967_v7  ;;  %v2973_v15 = vld [vmem:[#allocation7 + $0x30] ss:$12 sps:$4 sm:$0xff]   ;;  %v2975_v17 = vld [vmem:[#allocation7 + $0x4c] ss:$12 sps:$4 sm:$0xff]   ;;  %v2977_v18 = vld [vmem:[#allocation7 + $0x48] ss:$12 sps:$4 sm:$0xff]  }
  0xfd   : > { %2735 = vmatprep.subr.bf16.mxu1 %v3411_v5  ;;  %v2978_v19 = vld [vmem:[#allocation7 + $0x50] ss:$12 sps:$4 sm:$0xff]   ;;  %v2981_v21 = vld [vmem:[#allocation7 + $0x60] ss:$12 sps:$4 sm:$0xff]   ;;  %v2982_v22 = vld [vmem:[#allocation7 + $0x68] ss:$12 sps:$4 sm:$0xff]  }
  0xfe   : > { %v2979_v20 = vld [vmem:[#allocation7 + $0x64] ss:$12 sps:$4 sm:$0xff]   ;;  %v2983_v23 = vld [vmem:[#allocation7 + $0x7c] ss:$12 sps:$4 sm:$0xff]   ;;  %v2986_v25 = vld [vmem:[#allocation7 + $0x80] ss:$12 sps:$4 sm:$0xff]  }
  0xff   : > { %848 = vmatpush1.bf16.msra.mxu0 %v2969_v8  ;;  %v2985_v24 = vld [vmem:[#allocation7 + $0x78] ss:$12 sps:$4 sm:$0xff]   ;;  %v2987_v26 = vld [vmem:[#allocation7 + $0x94] ss:$12 sps:$4 sm:$0xff]   ;;  %v2989_v28 = vld [vmem:[#allocation7 + $0x90] ss:$12 sps:$4 sm:$0xff]  }
 0x100   : > { %2736 = vmatpush3.bf16.msra.mxu1 %v2970_v9  ;;  %849 = vmatprep.subr.bf16.mxu0 %v2971_v10  ;;  %v2990_v29 = vld [vmem:[#allocation7 + $0x98] ss:$12 sps:$4 sm:$0xff]   ;;  %v2993_v31 = vld [vmem:[#allocation7 + $0xa8] ss:$12 sps:$4 sm:$0xff]   ;;  %v2994_v32 = vld [vmem:[#allocation7 + $0xb0] ss:$12 sps:$4 sm:$0xff]  }
 0x101   : > { %2737 = vmatprep.subr.bf16.mxu1 %v3411_v5  ;;  %v2991_v30 = vld [vmem:[#allocation7 + $0xac] ss:$12 sps:$4 sm:$0xff]   ;;  %v2525_v37 = vld [vmem:[#allocation6] ss:$0 sm:$0xff]  ;;  %v2526_v39 = vld [vmem:[%s3972_s3] ss:$0 sm:$0xff] }
 0x102   : > { %v3802_v44 = vshrl.u32 %v702_v43, 7  ;;  %v700_v47 = vld [vmem:[%s3974_s5] sm:$0x7]  ;;  %vm1009_vm1 = vcmask 1043456   ;;  %vm945_vm2 = vcmask 261120   ;;  %s3415_s24 = smov 96  }
 0x103   : > { %850 = vmatpush1.bf16.msra.mxu0 %v2973_v15  ;;  %s3416_s4 = smov 32   ;;  %vm994_vm6 = vcmask 59392   ;;  %vm1005_vm7 = vcmask 64512   ;;  %vm1406_vm8 = vcmask 523264   ;;  %vm1408_vm9 = vcmask 785408   ;;  %s4019_s25 = sld [smem:[#allocation23_spill]] }
 0x104   : > { %2738 = vmatpush3.bf16.msra.mxu1 %v2974_v16  ;;  %851 = vmatprep.subr.bf16.mxu0 %v2975_v17  ;;  %v704_v45 = vsub.s32 0, %v3802_v44  ;;  %v712_v46 = vsub.s32 2, %v3802_v44  ;;  %v708_v48 = vsub.s32 1, %v3802_v44  ;;  %vm1528_vm10 = vcmask 1047557   ;;  %s4020_s26 = sld [smem:[#allocation24_spill]]  ;;  %s4021_s21 = sld [smem:[#allocation25_spill]] }
 0x105   : > { %2739 = vmatprep.subr.bf16.mxu1 %v3411_v5  ;;  %s4022_s28 = sld [smem:[#allocation26_spill]]  ;;  %s4023_s15 = sld [smem:[#allocation27_spill]] }
 0x106   : > { %v705_v49 = vrot.slane %v700_v47, %v704_v45  ;;  %v713_v50 = vrot.slane %v700_v47, %v712_v46  ;;  %v709_v51 = vrot.slane %v700_v47, %v708_v48  ;;  %p631_p12 = scmp.lt.s32.totalorder %s3523_s27, 1  ;;  %s4024_s19 = sld [smem:[#allocation28_spill]] }
 0x107   : > { %852 = vmatpush1.bf16.msra.mxu0 %v2977_v18  ;;  %s4025_s11 = sld [smem:[#allocation29_spill]] }
 0x108   : > { %2740 = vmatpush3.bf16.msra.mxu1 %v2978_v19  ;;  %853 = vmatprep.subr.bf16.mxu0 %v2979_v20  ;;  %v932_v20 = vand.u32 127, %v702_v43  ;;  %s4031_s27 = smov (!%p631_p12, %s3523_s27), 1 }
 0x109   : > { %2741 = vmatprep.subr.bf16.mxu1 %v3411_v5 }
 0x10a   : > { %vm933_vm3 = vcmp.lt.s32.totalorder %v932_v20, 5 }
 0x10b   : > { %854 = vmatpush1.bf16.msra.mxu0 %v2981_v21  ;;  %v934_v21 = vadd.s32 5, %v3802_v44 }
 0x10c   : > { %2742 = vmatpush3.bf16.msra.mxu1 %v2982_v22  ;;  %855 = vmatprep.subr.bf16.mxu0 %v2983_v23 }
 0x10d   : > { %2743 = vmatprep.subr.bf16.mxu1 %v3411_v5  ;;  %vm935_vm4 = vcmp.eq.s32.totalorder %v932_v20, %v934_v21 }
 0x10e   : > { %vm3849_vm5 = vmor %vm933_vm3, %vm935_vm4 }
 0x10f   : > { %856 = vmatpush1.bf16.msra.mxu0 %v2985_v24 }
 0x110   : > { %2744 = vmatpush3.bf16.msra.mxu1 %v2986_v25  ;;  %857 = vmatprep.subr.bf16.mxu0 %v2987_v26 }
 0x111   : > { %2745 = vmatprep.subr.bf16.mxu1 %v3411_v5 }
 0x113   : > { %858 = vmatpush1.bf16.msra.mxu0 %v2989_v28 }
 0x114   : > { %2746 = vmatpush3.bf16.msra.mxu1 %v2990_v29  ;;  %859 = vmatprep.subr.bf16.mxu0 %v2991_v30 }
 0x115   : > { %2747 = vmatprep.subr.bf16.mxu1 %v3411_v5 }
 0x117   : > { %860 = vmatpush1.bf16.msra.mxu0 %v2993_v31 }
 0x118   : > { %2748 = vmatpush3.bf16.msra.mxu1 %v2994_v32  ;;  %2753 = vmatprep.subr.bf16.mxu0 %v3411_v5 }
 0x119   : > { %2759 = vmatprep.subr.bf16.mxu1 %v3411_v5 }
 0x188   : > { %v642_v11 = vpop.xlane.xlu0 %641 }
 0x189   : > { %v644_v12 = vmul.f32 0.0078125, %v642_v11 }
 0x18b   : > { %v645_v13 = vsub.f32 %v3777_v2, %v644_v12 }
 0x18d   : > { %v646_v14 = vmul.f32 %v645_v13, %v645_v13 }
 0x18f   : > { %647 = vadd.xlane.f32.xlu0 %v646_v14 }
 0x21c   : > { %v648_v33 = vpop.xlane.xlu0 %647 }
 0x21d   : > { %v649_v34 = vmul.f32 0.0078125, %v648_v33 }
 0x21f   : > { %v650_v35 = vadd.f32 1e-05, %v649_v34 }
 0x221   : > { %3091 = vrsqrt.f32 %v650_v35 }
 0x22b   : > { %v3092_v36 = vpop.eup %3091 }
 0x22c   : > { %v652_v38 = vmul.f32 %v3092_v36, %v645_v13 }
 0x22e   : > { %v659_v40 = vmul.f32 %v2525_v37, %v652_v38 }
 0x230   : > { %v666_v41 = vadd.f32 %v2526_v39, %v659_v40 }
 0x232   : > { %v667_v42 = vpack.c.bf16 %v666_v41, %v666_v41 }
 0x234   : > { %878 = vmatmul.mubr.bf16.vlgmr.msra.gmra.mrb[0].mxu0 %v667_v42  ;;  %2750 = vmatmul.mubr.bf16.vlgmr.msra.gmra.mrb[0].mxu1 %v667_v42 }
 0x235   : > { %2755 = vmatprep.mubr.msk.bf16.mxu0 %vm3413_vm0, %v3411_v5  ;;  %2761 = vmatprep.mubr.msk.bf16.mxu1 %vm3413_vm0, %v3411_v5 }
 0x307   : > { %v879_v52 = vpop.f32.mrb[0].mxu0  ;;  %v920_v53 = vpop.f32.mrb[0].mxu1 }
 0x308   : > { %v880_v54 = vadd.f32 %v879_v52, %v705_v49  ;;  %v921_v55 = vadd.f32 %v920_v53, %v713_v50  ;;  %v881_v56 = vpop.f32.mrb[1].mxu0  ;;  %v2751_v57 = vpop.f32.mrb[1].mxu1 }
 0x309   : > { %v882_v58 = vadd.f32 %v881_v56, %v709_v51  ;;  %v883_v59 = vpop.f32.mrb[2].mxu0  ;;  %v923_v60 = vpop.f32.mrb[2].mxu1 }
 0x30a   : > { %v926_v61 = vpack.c.bf16 %v880_v54, %v880_v54  ;;  %v3816_v62 = vpack.c.bf16 %v921_v55, %v921_v55  ;;  %v884_v63 = vpop.f32.mrb[3].mxu0  ;;  %v2752_v0 = vpop.f32.mrb[3].mxu1 }
 0x30b   : > { %v927_v1 = vpack.c.bf16 %v882_v58, %v882_v58 }
 0x30c   : > { %v938_v3 = vshrl.u32 %v926_v61, 16  ;;  %v941_v4 = vshll.u32 %v926_v61, 16  ;;  %v1011_v6 = vsel %vm1009_vm1, %v3816_v62, 0 }
 0x30d   : > { %2760 = vmatpush3.bf16.msra.mxu1 %v1011_v6  ;;  %1171 = vrot.lane.b32.xlu0 %v927_v1, %s3414_s16  ;;  %v950_v7 = vsel %vm945_vm2, %v927_v1, 0 }
 0x30e   : > { %v940_v8 = vrot.slane %v938_v3, 2  ;;  %v943_v9 = vrot.slane %v941_v4, 3  ;;  %1058 = vrot.lane.b32.xlu1 %v927_v1, %s3415_s24  ;;  %2754 = vmatpush3.bf16.xpose.msra.mxu0 %v950_v7 }
 0x30f   : > { %2765 = vmatprep.subr.bf16.mxu0 %v3411_v5  ;;  %2771 = vmatprep.subr.bf16.mxu1 %v3411_v5 }
 0x310   : > { %v944_v10 = vor.u32 %v943_v9, %v940_v8 }
 0x312   : > { %1055 = vrot.lane.b32.xlu1 %v944_v10, %s3415_s24 }
 0x315   : > { %2756 = vmatmul.mubr.msk.bf16.vlgmr.msra.gmra.mrb[4].mxu0 %vm945_vm2, %v944_v10 }
 0x316   : > { %1169 = vrot.lane.b32.xlu1 %v944_v10, %s3414_s16  ;;  %2767 = vmatprep.mubr.msk.bf16.mxu0 %vm3413_vm0, %v3411_v5 }
 0x31a   : > { %1283 = vrot.lane.b32.xlu1 %v927_v1, %s3416_s4 }
 0x31e   : > { %1281 = vrot.lane.b32.xlu1 %v944_v10, %s3416_s4 }
 0x37f   : > { %v1172_v14 = vpop.permute.xlu0 %1171 }
 0x380   : > { %v1059_v11 = vpop.permute.xlu1 %1058  ;;  %v1177_v16 = vsel %vm945_vm2, %v1172_v14, 0 }
 0x381   : > { %v1064_v12 = vsel %vm945_vm2, %v1059_v11, 0 }
 0x382   : > { %2766 = vmatpush3.bf16.xpose.msra.mxu0 %v1064_v12 }
 0x383   : > { %2777 = vmatprep.subr.bf16.mxu0 %v3411_v5 }
 0x384   : > { %v1056_v13 = vpop.permute.xlu1 %1055 }
 0x388   : > { %v1170_v15 = vpop.permute.xlu1 %1169 }
 0x389   : > { %2768 = vmatmul.mubr.msk.bf16.vlgmr.msra.gmra.mrb[8].mxu0 %vm945_vm2, %v1056_v13 }
 0x38a   : > { %2778 = vmatpush3.bf16.xpose.msra.mxu0 %v1177_v16  ;;  %2779 = vmatprep.mubr.msk.bf16.mxu0 %vm3413_vm0, %v3411_v5 }
 0x38b   : > { %2789 = vmatprep.subr.bf16.mxu0 %v3411_v5 }
 0x38c   : > { %v1284_v17 = vpop.permute.xlu1 %1283 }
 0x38d   : > { %v1289_v18 = vsel %vm945_vm2, %v1284_v17, 0 }
 0x390   : > { %v1282_v19 = vpop.permute.xlu1 %1281 }
 0x391   : > { %2780 = vmatmul.mubr.msk.bf16.vlgmr.msra.gmra.mrb[12].mxu0 %vm945_vm2, %v1170_v15 }
 0x392   : > { %2790 = vmatpush3.bf16.xpose.msra.mxu0 %v1289_v18  ;;  %2791 = vmatprep.mubr.msk.bf16.mxu0 %vm3413_vm0, %v3411_v5 }
 0x393   : > { %2801 = vmatprep.subr.bf16.mxu0 %v3411_v5 }
 0x399   : > { %2792 = vmatmul.mubr.msk.bf16.vlgmr.msra.gmra.mrb[16].mxu0 %vm945_vm2, %v1282_v19 }
 0x39a   : > { %2817 = vmatprep.mubr.msk.bf16.mxu0 %vm3413_vm0, %v3411_v5 }
 0x3e8   : > { %v986_v22 = vpop.f32.mrb[4].mxu0 }
 0x3e9   : > { %v992_v24 = vmul.f32 0.17677669, %v986_v22  ;;  %v2757_v25 = vpop.f32.mrb[5].mxu0 }
 0x3ea   : > { %v989_v26 = vpop.f32.mrb[6].mxu0 }
 0x3eb   : > { %v2758_v28 = vpop.f32.mrb[7].mxu0  ;;  %v993_v29 = vsel %vm3849_vm5, %v992_v24, -inf }
 0x3ec   : > { %v995_v30 = vsel %vm994_vm6, %v993_v29, -inf }
 0x3ed   : > { %996 = vmax.xlane.f32.xlu1 %v995_v30  ;;  %v2996_v30 = vld [vmem:[#allocation9 + $0x8] sm:$0xff]  }
 0x3fe   : > { %1231 = vrot.lane.b32.xlu1 %v3816_v62, %s3414_s16 }
 0x45c   : > { %v1100_v31 = vpop.f32.mrb[8].mxu0 }
 0x45d   : > { %v1106_v32 = vmul.f32 0.17677669, %v1100_v31  ;;  %v2769_v33 = vpop.f32.mrb[9].mxu0  ;;  %v2997_v31 = vld [vmem:[#allocation9 + $0x10] sm:$0xff]  }
 0x45e   : > { %v1103_v34 = vpop.f32.mrb[10].mxu0  ;;  %v2998_v33 = vld [vmem:[#allocation9 + $0x18] sm:$0xff]  }
 0x45f   : > { %v2770_v35 = vpop.f32.mrb[11].mxu0  ;;  %v1107_v36 = vsel %vm3849_vm5, %v1106_v32, -inf  ;;  %v2999_v34 = vld [vmem:[#allocation9 + $0x20] sm:$0xff]  }
 0x460   : > { %v1108_v37 = vsel %vm994_vm6, %v1107_v36, -inf }
 0x461   : > { %1109 = vmax.xlane.f32.xlu0 %v1108_v37  ;;  %v3001_v37 = vld [vmem:[#allocation9 + $0x30] sm:$0xff]  }
 0x464   : > { %v1213_v38 = vpop.f32.mrb[12].mxu0 }
 0x465   : > { %v1219_v39 = vmul.f32 0.17677669, %v1213_v38  ;;  %v2781_v40 = vpop.f32.mrb[13].mxu0 }
 0x466   : > { %v1216_v41 = vpop.f32.mrb[14].mxu0 }
 0x467   : > { %v2782_v42 = vpop.f32.mrb[15].mxu0  ;;  %v1220_v43 = vsel %vm3849_vm5, %v1219_v39, -inf }
 0x468   : > { %v1221_v47 = vsel %vm994_vm6, %v1220_v43, -inf }
 0x469   : > { %1222 = vmax.xlane.f32.xlu1 %v1221_v47 }
 0x46c   : > { %v1325_v49 = vpop.f32.mrb[16].mxu0 }
 0x46d   : > { %v1331_v50 = vmul.f32 0.17677669, %v1325_v49  ;;  %v2793_v51 = vpop.f32.mrb[17].mxu0  ;;  %v3002_v49 = vld [vmem:[#allocation9 + $0x38] sm:$0xff]  }
 0x46e   : > { %v1328_v52 = vpop.f32.mrb[18].mxu0 }
 0x46f   : > { %v2794_v53 = vpop.f32.mrb[19].mxu0  ;;  %v1332_v54 = vsel %vm3849_vm5, %v1331_v50, -inf }
 0x470   : > { %v1333_v55 = vsel %vm994_vm6, %v1332_v54, -inf }
 0x471   : > { %1334 = vmax.xlane.f32.xlu1 %v1333_v55 }
 0x477   : > { %1119 = vrot.lane.b32.xlu0 %v3816_v62, %s3415_s24 }
 0x47a   : > { %v997_v56 = vpop.xlane.xlu1 %996 }
 0x47b   : > { %v998_v57 = vsub.f32 %v993_v29, %v997_v56  ;;  %v2995_v29 = vld [vmem:[#allocation9] sm:$0xff]  }
 0x47c   : > { %2802 = vmatpush3.bf16.msra.mxu0 %v2995_v29  ;;  %v3009_v29 = vld [vmem:[#allocation10 + $0x20] ss:$16 sps:$4 sm:$0xff]  }
 0x47d   : > { %v999_v58 = vmul.f32 1.442695, %v998_v57  ;;  %2803 = vmatprep.subr.bf16.mxu0 %v3411_v5 }
 0x47e   : > { %v1232_v1 = vpop.permute.xlu1 %1231 }
 0x47f   : > { %3093 = vpow2.f32 %v999_v58  ;;  %v1237_v13 = vsel %vm1009_vm1, %v1232_v1, 0 }
 0x480   : > { %2804 = vmatpush3.bf16.msra.mxu0 %v2996_v30  ;;  %v3012_v30 = vld [vmem:[#allocation10 + $0x28] ss:$16 sps:$4 sm:$0xff]  }
 0x481   : > { %2805 = vmatprep.subr.bf16.mxu0 %v3411_v5 }
 0x482   : > { %1343 = vrot.lane.b32.xlu1 %v3816_v62, %s3416_s4 }
 0x484   : > { %2806 = vmatpush3.bf16.msra.mxu0 %v2997_v31  ;;  %v3017_v31 = vld [vmem:[#allocation10 + $0x44] ss:$16 sps:$4 sm:$0xff]  }
 0x485   : > { %2807 = vmatprep.subr.bf16.mxu0 %v3411_v5 }
 0x488   : > { %2808 = vmatpush3.bf16.msra.mxu0 %v2998_v33  ;;  %v3015_v33 = vld [vmem:[#allocation10 + $0x40] ss:$16 sps:$4 sm:$0xff]  }
 0x489   : > { %v3094_v59 = vpop.eup %3093  ;;  %2809 = vmatprep.subr.bf16.mxu0 %v3411_v5 }
 0x48a   : > { %v1004_v60 = vpack.c.bf16 %v3094_v59, %v3094_v59  ;;  %v1001_v23 = vsel %vm994_vm6, %v3094_v59, 0.0 }
 0x48c   : > { %2762 = vmatmul.mubr.msk.bf16.vlgmr.msra.gmra.mrb[4].mxu1 %vm1005_vm7, %v1004_v60  ;;  %2810 = vmatpush3.bf16.msra.mxu0 %v2999_v34  ;;  %v3018_v34 = vld [vmem:[#allocation10 + $0x48] ss:$16 sps:$4 sm:$0xff]  }
 0x48d   : > { %2773 = vmatprep.mubr.msk.bf16.mxu1 %vm3413_vm0, %v3411_v5  ;;  %2811 = vmatprep.subr.bf16.mxu0 %v3411_v5 }
 0x4ee   : > { %v1110_v61 = vpop.xlane.xlu0 %1109 }
 0x4ef   : > { %v1111_v63 = vsub.f32 %v1107_v36, %v1110_v61  ;;  %v3000_v36 = vld [vmem:[#allocation9 + $0x28] sm:$0xff]  }
 0x4f0   : > { %2812 = vmatpush3.bf16.msra.mxu0 %v3000_v36  ;;  %v3026_v36 = vld [vmem:[#allocation10 + $0x6c] ss:$16 sps:$4 sm:$0xff]  }
 0x4f1   : > { %v1112_v0 = vmul.f32 1.442695, %v1111_v63  ;;  %2813 = vmatprep.subr.bf16.mxu0 %v3411_v5 }
 0x4f2   : > { %v1120_v3 = vpop.permute.xlu0 %1119 }
 0x4f3   : > { %3095 = vpow2.f32 %v1112_v0  ;;  %v1125_v4 = vsel %vm1009_vm1, %v1120_v3, 0 }
 0x4f4   : > { %2772 = vmatpush3.bf16.msra.mxu1 %v1125_v4  ;;  %2814 = vmatpush3.bf16.msra.mxu0 %v3001_v37  ;;  %v3021_v37 = vld [vmem:[#allocation10 + $0x60] ss:$16 sps:$4 sm:$0xff]  }
 0x4f5   : > { %2783 = vmatprep.subr.bf16.mxu1 %v3411_v5  ;;  %2815 = vmatprep.subr.bf16.mxu0 %v3411_v5 }
 0x4f6   : > { %v1223_v62 = vpop.xlane.xlu1 %1222 }
 0x4f7   : > { %v1224_v6 = vsub.f32 %v1220_v43, %v1223_v62 }
 0x4f8   : > { %2816 = vmatpush3.bf16.msra.mxu0 %v3002_v49  ;;  %v3033_v49 = vld [vmem:[#allocation10 + $0xa0] ss:$16 sps:$4 sm:$0xff]  }
 0x4f9   : > { %v1225_v7 = vmul.f32 1.442695, %v1224_v6 }
 0x4fb   : > { %3097 = vpow2.f32 %v1225_v7 }
 0x4fd   : > { %v3096_v8 = vpop.eup %3095 }
 0x4fe   : > { %v1335_v9 = vpop.xlane.xlu1 %1334  ;;  %v1114_v10 = vsel %vm994_vm6, %v3096_v8, 0.0  ;;  %v1117_v11 = vpack.c.bf16 %v3096_v8, %v3096_v8 }
 0x4ff   : > { %v1336_v12 = vsub.f32 %v1332_v54, %v1335_v9  ;;  %1115 = vadd.xlane.f32.xlu0 %v1114_v10  ;;  %v2559_v10 = vld [vmem:[%s4019_s25] ss:$0 sm:$0xff] }
 0x500   : > { %2774 = vmatmul.mubr.msk.bf16.vlgmr.msra.gmra.mrb[8].mxu1 %vm1005_vm7, %v1117_v11 }
 0x501   : > { %v1337_v14 = vmul.f32 1.442695, %v1336_v12  ;;  %2784 = vmatpush3.bf16.msra.mxu1 %v1237_v13  ;;  %2785 = vmatprep.mubr.msk.bf16.mxu1 %vm3413_vm0, %v3411_v5 }
 0x502   : > { %2795 = vmatprep.subr.bf16.mxu1 %v3411_v5  ;;  %v1344_v16 = vpop.permute.xlu1 %1343 }
 0x503   : > { %3099 = vpow2.f32 %v1337_v14  ;;  %v1349_v19 = vsel %vm1009_vm1, %v1344_v16, 0 }
 0x505   : > { %v3098_v15 = vpop.eup %3097 }
 0x506   : > { %v1227_v17 = vsel %vm994_vm6, %v3098_v15, 0.0  ;;  %v1230_v18 = vpack.c.bf16 %v3098_v15, %v3098_v15 }
 0x507   : > { %1228 = vadd.xlane.f32.xlu1 %v1227_v17 }
 0x508   : > { %2786 = vmatmul.mubr.msk.bf16.vlgmr.msra.gmra.mrb[12].mxu1 %vm1005_vm7, %v1230_v18 }
 0x509   : > { %2796 = vmatpush3.bf16.msra.mxu1 %v1349_v19  ;;  %2797 = vmatprep.mubr.msk.bf16.mxu1 %vm3413_vm0, %v3411_v5  ;;  %v3003_v19 = vld [vmem:[#allocation10] ss:$16 sps:$4 sm:$0xff]  }
 0x50d   : > { %v3100_v20 = vpop.eup %3099 }
 0x50e   : > { %v1339_v21 = vsel %vm994_vm6, %v3100_v20, 0.0  ;;  %v1342_v22 = vpack.c.bf16 %v3100_v20, %v3100_v20  ;;  %v3006_v20 = vld [vmem:[#allocation10 + $0x8] ss:$16 sps:$4 sm:$0xff]  }
 0x50f   : > { %1340 = vadd.xlane.f32.xlu0 %v1339_v21  ;;  %v3008_v21 = vld [vmem:[#allocation10 + $0xc] ss:$16 sps:$4 sm:$0xff]  }
 0x510   : > { %2798 = vmatmul.mubr.msk.bf16.vlgmr.msra.gmra.mrb[16].mxu1 %vm1005_vm7, %v1342_v22  ;;  %1821 = vmatprep.subr.bf16.mxu0 %v3008_v21  ;;  %v3060_v21 = vld [vmem:[#allocation12 + $0xd0] sm:$0xff]  }
 0x511   : > { %1812 = vmatprep.mubr.bf16.mxu1 %v3412_v27 }
 0x513   : > { %1002 = vadd.xlane.f32.xlu0 %v1001_v23 }
 0x55f   : > { %v1047_v24 = vpop.f32.mrb[4].mxu1 }
 0x560   : > { %v2763_v25 = vpop.f32.mrb[5].mxu1 }
 0x561   : > { %v1050_v26 = vpop.f32.mrb[6].mxu1 }
 0x562   : > { %v2764_v28 = vpop.f32.mrb[7].mxu1  ;;  %v3011_v26 = vld [vmem:[#allocation10 + $0x24] ss:$16 sps:$4 sm:$0xff]  }
 0x563   : > { %v3014_v28 = vld [vmem:[#allocation10 + $0x2c] ss:$16 sps:$4 sm:$0xff]  }
 0x58c   : > { %v1116_v32 = vpop.xlane.xlu0 %1115 }
 0x58d   : > { %3101 = vrcp.f32 %v1116_v32  ;;  %v3020_v32 = vld [vmem:[#allocation10 + $0x4c] ss:$16 sps:$4 sm:$0xff]  }
 0x594   : > { %v1229_v35 = vpop.xlane.xlu1 %1228 }
 0x595   : > { %3103 = vrcp.f32 %v1229_v35  ;;  %v3023_v35 = vld [vmem:[#allocation10 + $0x64] ss:$16 sps:$4 sm:$0xff]  }
 0x597   : > { %v3102_v38 = vpop.eup %3101 }
 0x59c   : > { %v1341_v43 = vpop.xlane.xlu0 %1340 }
 0x59d   : > { %3105 = vrcp.f32 %v1341_v43  ;;  %v3035_v43 = vld [vmem:[#allocation10 + $0xa4] ss:$16 sps:$4 sm:$0xff]  }
 0x59f   : > { %v3104_v50 = vpop.eup %3103 }
 0x5a0   : > { %v1003_v63 = vpop.xlane.xlu0 %1002 }
 0x5a1   : > { %3107 = vrcp.f32 %v1003_v63 }
 0x5a7   : > { %v3106_v56 = vpop.eup %3105 }
 0x5ab   : > { %v3108_v0 = vpop.eup %3107 }
 0x5ac   : > { %v1054_v3 = vmul.f32 %v3108_v0, %v1047_v24  ;;  %v2568_v0 = vld [vmem:[%s4020_s26] ss:$0 sm:$0xff] }
 0x5d3   : > { %v1161_v39 = vpop.f32.mrb[8].mxu1 }
 0x5d4   : > { %v1168_v40 = vmul.f32 %v3102_v38, %v1161_v39  ;;  %v2775_v41 = vpop.f32.mrb[9].mxu1  ;;  %v3024_v38 = vld [vmem:[#allocation10 + $0x68] ss:$16 sps:$4 sm:$0xff]   ;;  %v3029_v39 = vld [vmem:[#allocation10 + $0x84] ss:$16 sps:$4 sm:$0xff]  }
 0x5d5   : > { %v1164_v42 = vpop.f32.mrb[10].mxu1  ;;  %v3027_v41 = vld [vmem:[#allocation10 + $0x80] ss:$16 sps:$4 sm:$0xff]  }
 0x5d6   : > { %v2776_v47 = vpop.f32.mrb[11].mxu1  ;;  %1394 = vrot.lane.b32.xlu1 %v1168_v40, %s3416_s4  ;;  %v3032_v40 = vld [vmem:[#allocation10 + $0x8c] ss:$16 sps:$4 sm:$0xff]   ;;  %v3030_v42 = vld [vmem:[#allocation10 + $0x88] ss:$16 sps:$4 sm:$0xff]  }
 0x5d7   : > { %v3038_v47 = vld [vmem:[#allocation10 + $0xac] ss:$16 sps:$4 sm:$0xff]  }
 0x5db   : > { %v1273_v51 = vpop.f32.mrb[12].mxu1 }
 0x5dc   : > { %v1280_v52 = vmul.f32 %v3104_v50, %v1273_v51  ;;  %v2787_v53 = vpop.f32.mrb[13].mxu1  ;;  %v3036_v50 = vld [vmem:[#allocation10 + $0xa8] ss:$16 sps:$4 sm:$0xff]   ;;  %v3041_v51 = vld [vmem:[#allocation10 + $0xc4] ss:$16 sps:$4 sm:$0xff]  }
 0x5dd   : > { %v1276_v54 = vpop.f32.mrb[14].mxu1  ;;  %v3039_v53 = vld [vmem:[#allocation10 + $0xc0] ss:$16 sps:$4 sm:$0xff]  }
 0x5de   : > { %v2788_v55 = vpop.f32.mrb[15].mxu1  ;;  %1398 = vrot.lane.b32.xlu0 %v1280_v52, %s3414_s16  ;;  %v3044_v52 = vld [vmem:[#allocation10 + $0xcc] ss:$16 sps:$4 sm:$0xff]   ;;  %v3042_v54 = vld [vmem:[#allocation10 + $0xc8] ss:$16 sps:$4 sm:$0xff]   ;;  %s2524_s16 = sshll.u32 %s4031_s27, 2 }
 0x5df   : > { %v3047_v55 = vld [vmem:[#allocation10 + $0xe4] ss:$16 sps:$4 sm:$0xff]   ;;  %s634_s13 = scalar_lea.vmem %s4025_s11, %s2524_s16 }
 0x5e3   : > { %v1385_v57 = vpop.f32.mrb[16].mxu1 }
 0x5e4   : > { %v1392_v58 = vmul.f32 %v3106_v56, %v1385_v57  ;;  %v2799_v59 = vpop.f32.mrb[17].mxu1  ;;  %v3050_v56 = vld [vmem:[#allocation10 + $0xec] ss:$16 sps:$4 sm:$0xff]   ;;  %v3045_v57 = vld [vmem:[#allocation10 + $0xe0] ss:$16 sps:$4 sm:$0xff]  }
 0x5e5   : > { %v1388_v60 = vpop.f32.mrb[18].mxu1 }
 0x5e6   : > { %1402 = vrot.lane.b32.xlu1 %v1392_v58, %s3415_s24  ;;  %v2800_v61 = vpop.f32.mrb[19].mxu1  ;;  %v3048_v58 = vld [vmem:[#allocation10 + $0xe8] ss:$16 sps:$4 sm:$0xff]  }
 0x648   : > { %v1395_v1 = vpop.permute.xlu1 %1394 }
 0x649   : > { %v1405_v62 = vsel %vm945_vm2, %v1054_v3, %v1395_v1  ;;  %v2569_v3 = vld [vmem:[%s4021_s21] ss:$0 sm:$0xff] }
 0x650   : > { %v1399_v4 = vpop.permute.xlu0 %1398 }
 0x651   : > { %v1407_v6 = vsel %vm1406_vm8, %v1405_v62, %v1399_v4 }
 0x658   : > { %v1403_v7 = vpop.permute.xlu1 %1402 }
 0x659   : > { %v1409_v8 = vsel %vm1408_vm9, %v1407_v6, %v1403_v7 }
 0x65a   : > { %v1410_v9 = vpack.c.bf16 %v1409_v8, %v1409_v8 }
 0x65c   : > { %2818 = vmatmul.mubr.bf16.vlgmr.msra.gmra.mrb[20].mxu0 %v1410_v9 }
 0x65d   : > { %1853 = vmatprep.mubr.bf16.mxu0 %v3412_v27  ;;  %v3005_v27 = vld [vmem:[#allocation10 + $0x4] ss:$16 sps:$4 sm:$0xff]   ;;  %1822 = vmatpush1.bf16.msra.mxu0 %v3006_v20 }
 0x65e   : > { %1780 = vmatprep.subr.bf16.mxu1 %v3005_v27  ;;  %1823 = vmatprep.subr.bf16.mxu0 %v3014_v28  ;;  %v3058_v27 = vld [vmem:[#allocation12 + $0x88] sm:$0xff]   ;;  %v3059_v20 = vld [vmem:[#allocation12 + $0x50] sm:$0xff]   ;;  %v3067_v28 = vld [vmem:[#allocation12 + $0x60] sm:$0xff]  }
 0x65f   : > { %1781 = vmatpush1.bf16.msra.mxu1 %v3003_v19  ;;  %v3057_v19 = vld [vmem:[#allocation12 + $0x8] sm:$0xff]  }
 0x660   : > { %1782 = vmatprep.subr.bf16.mxu1 %v3011_v26  ;;  %v3066_v26 = vld [vmem:[#allocation12 + $0x98] sm:$0xff]  }
 0x661   : > { %1824 = vmatpush1.bf16.msra.mxu0 %v3012_v30  ;;  %v3069_v30 = vld [vmem:[#allocation12 + $0x20] sm:$0xff]  }
 0x662   : > { %1825 = vmatprep.subr.bf16.mxu0 %v3020_v32  ;;  %v3071_v32 = vld [vmem:[#allocation12 + $0x68] sm:$0xff]  }
 0x663   : > { %1783 = vmatpush1.bf16.msra.mxu1 %v3009_v29  ;;  %v3068_v29 = vld [vmem:[#allocation12 + $0xe0] sm:$0xff]  }
 0x664   : > { %1784 = vmatprep.subr.bf16.mxu1 %v3017_v31  ;;  %v3070_v31 = vld [vmem:[#allocation12 + $0xa0] sm:$0xff]  }
 0x665   : > { %1826 = vmatpush1.bf16.msra.mxu0 %v3018_v34  ;;  %v3073_v34 = vld [vmem:[#allocation12 + $0x28] sm:$0xff]  }
 0x666   : > { %1827 = vmatprep.subr.bf16.mxu0 %v3026_v36  ;;  %v3075_v36 = vld [vmem:[#allocation12 + $0x70] sm:$0xff]  }
 0x667   : > { %1785 = vmatpush1.bf16.msra.mxu1 %v3015_v33  ;;  %v3072_v33 = vld [vmem:[#allocation12 + $0xe8] sm:$0xff]  }
 0x668   : > { %1786 = vmatprep.subr.bf16.mxu1 %v3023_v35  ;;  %v3074_v35 = vld [vmem:[#allocation12 + $0xa8] sm:$0xff]  }
 0x669   : > { %1828 = vmatpush1.bf16.msra.mxu0 %v3024_v38  ;;  %v3077_v38 = vld [vmem:[#allocation12 + $0x30] sm:$0xff]  }
 0x66a   : > { %1829 = vmatprep.subr.bf16.mxu0 %v3032_v40  ;;  %v3079_v40 = vld [vmem:[#allocation12 + $0x78] sm:$0xff]  }
 0x66b   : > { %1787 = vmatpush1.bf16.msra.mxu1 %v3021_v37  ;;  %v3076_v37 = vld [vmem:[#allocation12 + $0xf0] sm:$0xff]  }
 0x66c   : > { %1788 = vmatprep.subr.bf16.mxu1 %v3029_v39  ;;  %v3078_v39 = vld [vmem:[#allocation12 + $0xb0] sm:$0xff]  }
 0x66d   : > { %1830 = vmatpush1.bf16.msra.mxu0 %v3030_v42  ;;  %v3081_v42 = vld [vmem:[#allocation12 + $0x38] sm:$0xff]  }
 0x66e   : > { %1831 = vmatprep.subr.bf16.mxu0 %v3038_v47  ;;  %v1589_v47 = vld [vmem:[%s4022_s28] sm:$0xf] }
 0x66f   : > { %1789 = vmatpush1.bf16.msra.mxu1 %v3027_v41  ;;  %v3080_v41 = vld [vmem:[#allocation12 + $0xf8] sm:$0xff]  }
 0x670   : > { %1790 = vmatprep.subr.bf16.mxu1 %v3035_v43  ;;  %v3082_v43 = vld [vmem:[#allocation12 + $0xb8] sm:$0xff]  }
 0x671   : > { %1832 = vmatpush1.bf16.msra.mxu0 %v3036_v50  ;;  %v1594_v50 = vrot.slane %v1589_v47, %v704_v45 }
 0x672   : > { %1833 = vmatprep.subr.bf16.mxu0 %v3044_v52  ;;  %v1598_v52 = vrot.slane %v1589_v47, %v708_v48 }
 0x673   : > { %1791 = vmatpush1.bf16.msra.mxu1 %v3033_v49  ;;  %v1605_v49 = vsub.s32 3, %v3802_v44 }
 0x674   : > { %1792 = vmatprep.subr.bf16.mxu1 %v3041_v51  ;;  %v1602_v51 = vrot.slane %v1589_v47, %v712_v46 }
 0x675   : > { %1834 = vmatpush1.bf16.msra.mxu0 %v3042_v54 }
 0x676   : > { %1835 = vmatprep.subr.bf16.mxu0 %v3050_v56 }
 0x677   : > { %1793 = vmatpush1.bf16.msra.mxu1 %v3039_v53  ;;  %v1606_v53 = vrot.slane %v1589_v47, %v1605_v49  ;;  %v3087_v47 = vld [vmem:[#allocation13 + $0x20] sm:$0xff]   ;;  %v3088_v49 = vld [vmem:[#allocation13 + $0x28] sm:$0xff]  }
 0x678   : > { %1794 = vmatprep.subr.bf16.mxu1 %v3047_v55 }
 0x679   : > { %1836 = vmatpush1.bf16.msra.mxu0 %v3048_v58 }
 0x67b   : > { %1795 = vmatpush1.bf16.msra.mxu1 %v3045_v57 }
 0x72f   : > { %v1516_v11 = vpop.f32.mrb[20].mxu0 }
 0x730   : > { %v1517_v12 = vadd.f32 %v2559_v10, %v1516_v11  ;;  %v2819_v13 = vpop.f32.mrb[21].mxu0 }
 0x731   : > { %v1519_v14 = vpop.f32.mrb[22].mxu0  ;;  %v3052_v13 = vld [vmem:[#allocation12 + $0xc0] sm:$0xff]  }
 0x732   : > { %v1523_v15 = vrot.slane %v1517_v12, 3  ;;  %v2820_v16 = vpop.f32.mrb[23].mxu0  ;;  %v3051_v12 = vld [vmem:[#allocation12 + $0x40] sm:$0xff]   ;;  %2702 = vmatprep.subr.bf16.mxu0 %v3052_v13 }
 0x733   : > { %v3053_v14 = vld [vmem:[#allocation12] sm:$0xff]   ;;  %2680 = vmatprep.subr.bf16.mxu1 %v3051_v12  ;;  %v3055_v16 = vld [vmem:[#allocation12 + $0x48] sm:$0xff]  }
 0x734   : > { %v3907_v17 = vadd.f32 %v1523_v15, %v3777_v2  ;;  %v3054_v15 = vld [vmem:[#allocation12 + $0x80] sm:$0xff]  }
 0x736   : > { %v1529_v18 = vsel %vm1528_vm10, %v3907_v17, 0.0 }
 0x737   : > { %1530 = vadd.xlane.f32.xlu1 %v1529_v18  ;;  %v3056_v18 = vld [vmem:[#allocation12 + $0xc8] sm:$0xff]  }
 0x7c4   : > { %v1531_v22 = vpop.xlane.xlu1 %1530 }
 0x7c5   : > { %v1532_v23 = vmul.f32 0.0078125, %v1531_v22  ;;  %v3061_v22 = vld [vmem:[#allocation12 + $0x10] sm:$0xff]  }
 0x7c7   : > { %v3912_v24 = vsub.f32 %v3907_v17, %v1532_v23  ;;  %v3062_v23 = vld [vmem:[#allocation12 + $0x90] sm:$0xff]  }
 0x7c9   : > { %v1534_v2 = vmul.f32 %v3912_v24, %v3912_v24 }
 0x7cb   : > { %v1535_v25 = vsel %vm1528_vm10, %v1534_v2, 0.0  ;;  %v3064_v2 = vld [vmem:[#allocation12 + $0xd8] sm:$0xff]  }
 0x7cc   : > { %1536 = vadd.xlane.f32.xlu0 %v1535_v25  ;;  %v3065_v25 = vld [vmem:[#allocation12 + $0x18] sm:$0xff]  }
 0x859   : > { %v1537_v59 = vpop.xlane.xlu0 %1536 }
 0x85a   : > { %v1538_v60 = vmul.f32 0.0078125, %v1537_v59 }
 0x85c   : > { %v1539_v61 = vadd.f32 1e-05, %v1538_v60 }
 0x85e   : > { %3109 = vrsqrt.f32 %v1539_v61 }
 0x868   : > { %v3110_v63 = vpop.eup %3109 }
 0x869   : > { %v1541_v1 = vmul.f32 %v3110_v63, %v3912_v24  ;;  %v3063_v24 = vld [vmem:[#allocation12 + $0x58] sm:$0xff]  }
 0x86b   : > { %v1548_v4 = vmul.f32 %v2568_v0, %v1541_v1 }
 0x86d   : > { %v1555_v62 = vadd.f32 %v2569_v3, %v1548_v4 }
 0x86f   : > { %v1556_v6 = vpack.c.bf16 %v1555_v62, %v1555_v62 }
 0x871   : > { %v1612_v7 = vshrl.u32 %v1556_v6, 16  ;;  %v1615_v8 = vshll.u32 %v1556_v6, 16 }
 0x873   : > { %v1614_v9 = vrot.slane %v1612_v7, 2  ;;  %v1617_v10 = vrot.slane %v1615_v8, 3 }
 0x875   : > { %v1618_v11 = vor.u32 %v1617_v10, %v1614_v9 }
 0x877   : > { %1813 = vmatmul.mubr.bf16.vlgmr.msra.gmra.mrb[20].mxu1 %v1618_v11  ;;  %1854 = vmatmul.mubr.bf16.vlgmr.msra.gmra.mrb[24].mxu0 %v1618_v11 }
 0x878   : > { %2681 = vmatpush3.bf16.msra.mxu1 %v3053_v14  ;;  %2703 = vmatpush3.bf16.msra.mxu0 %v3054_v15 }
 0x879   : > { %2682 = vmatprep.subr.bf16.mxu1 %v3055_v16  ;;  %2704 = vmatprep.subr.bf16.mxu0 %v3056_v18 }
 0x87c   : > { %2683 = vmatpush3.bf16.msra.mxu1 %v3057_v19  ;;  %2705 = vmatpush3.bf16.msra.mxu0 %v3058_v27 }
 0x87d   : > { %2684 = vmatprep.subr.bf16.mxu1 %v3059_v20  ;;  %2706 = vmatprep.subr.bf16.mxu0 %v3060_v21 }
 0x880   : > { %2685 = vmatpush3.bf16.msra.mxu1 %v3061_v22  ;;  %2707 = vmatpush3.bf16.msra.mxu0 %v3062_v23 }
 0x881   : > { %2686 = vmatprep.subr.bf16.mxu1 %v3063_v24  ;;  %2708 = vmatprep.subr.bf16.mxu0 %v3064_v2 }
 0x884   : > { %2687 = vmatpush3.bf16.msra.mxu1 %v3065_v25  ;;  %2709 = vmatpush3.bf16.msra.mxu0 %v3066_v26 }
 0x885   : > { %2688 = vmatprep.subr.bf16.mxu1 %v3067_v28  ;;  %2710 = vmatprep.subr.bf16.mxu0 %v3068_v29 }
 0x888   : > { %2689 = vmatpush3.bf16.msra.mxu1 %v3069_v30  ;;  %2711 = vmatpush3.bf16.msra.mxu0 %v3070_v31 }
 0x889   : > { %2690 = vmatprep.subr.bf16.mxu1 %v3071_v32  ;;  %2712 = vmatprep.subr.bf16.mxu0 %v3072_v33 }
 0x88c   : > { %2691 = vmatpush3.bf16.msra.mxu1 %v3073_v34  ;;  %2713 = vmatpush3.bf16.msra.mxu0 %v3074_v35 }
 0x88d   : > { %2692 = vmatprep.subr.bf16.mxu1 %v3075_v36  ;;  %2714 = vmatprep.subr.bf16.mxu0 %v3076_v37  ;;  %v3083_v37 = vld [vmem:[#allocation13] sm:$0xff]  }
 0x890   : > { %2693 = vmatpush3.bf16.msra.mxu1 %v3077_v38  ;;  %2715 = vmatpush3.bf16.msra.mxu0 %v3078_v39 }
 0x891   : > { %2694 = vmatprep.subr.bf16.mxu1 %v3079_v40  ;;  %2716 = vmatprep.subr.bf16.mxu0 %v3080_v41  ;;  %v3084_v41 = vld [vmem:[#allocation13 + $0x8] sm:$0xff]  }
 0x894   : > { %2695 = vmatpush3.bf16.msra.mxu1 %v3081_v42  ;;  %2717 = vmatpush3.bf16.msra.mxu0 %v3082_v43  ;;  %v3085_v42 = vld [vmem:[#allocation13 + $0x10] sm:$0xff]   ;;  %v3086_v43 = vld [vmem:[#allocation13 + $0x18] sm:$0xff]  }
 0x895   : > { %2821 = vmatprep.subr.bf16.mxu1 %v3411_v5 }
 0x94a   : > { %v1814_v54 = vpop.f32.mrb[20].mxu1  ;;  %v1855_v55 = vpop.f32.mrb[24].mxu0 }
 0x94b   : > { %v1815_v56 = vadd.f32 %v1814_v54, %v1594_v50  ;;  %v1856_v57 = vadd.f32 %v1855_v55, %v1602_v51  ;;  %v1816_v58 = vpop.f32.mrb[21].mxu1  ;;  %v1857_v59 = vpop.f32.mrb[25].mxu0  ;;  %v3089_v50 = vld [vmem:[#allocation13 + $0x30] sm:$0xff]   ;;  %v3090_v51 = vld [vmem:[#allocation13 + $0x38] sm:$0xff]   ;;  %v2602_v54 = vld [vmem:[%s4023_s15] ss:$0 sm:$0xff] }
 0x94c   : > { %v1817_v60 = vadd.f32 %v1816_v58, %v1598_v52  ;;  %v1858_v61 = vadd.f32 %v1857_v59, %v1606_v53  ;;  %v1818_v63 = vpop.f32.mrb[22].mxu1  ;;  %v1859_v0 = vpop.f32.mrb[26].mxu0 }
 0x94d   : > { %v1862_v1 = vmul.f32 %v1815_v56, %v1815_v56  ;;  %v1864_v3 = vmul.f32 %v1856_v57, %v1856_v57  ;;  %v1819_v45 = vpop.f32.mrb[23].mxu1  ;;  %v1860_v4 = vpop.f32.mrb[27].mxu0 }
 0x94e   : > { %v1863_v62 = vmul.f32 %v1817_v60, %v1817_v60  ;;  %v1865_v46 = vmul.f32 %v1858_v61, %v1858_v61 }
 0x94f   : > { %v1866_v6 = vmul.f32 %v1862_v1, %v1815_v56  ;;  %v1868_v44 = vmul.f32 %v1864_v3, %v1856_v57 }
 0x950   : > { %v1867_v48 = vmul.f32 %v1863_v62, %v1817_v60  ;;  %v1869_v7 = vmul.f32 %v1865_v46, %v1858_v61 }
 0x951   : > { %v1870_v8 = vmul.f32 0.044715, %v1866_v6  ;;  %v1872_v9 = vmul.f32 0.044715, %v1868_v44 }
 0x952   : > { %v1871_v10 = vmul.f32 0.044715, %v1867_v48  ;;  %v1873_v11 = vmul.f32 0.044715, %v1869_v7  ;;  %v2635_v48 = vld [vmem:[%s4024_s19] ss:$0 sm:$0xff] }
 0x953   : > { %v1874_v12 = vadd.f32 %v1870_v8, %v1815_v56  ;;  %v1876_v13 = vadd.f32 %v1872_v9, %v1856_v57 }
 0x954   : > { %v1875_v14 = vadd.f32 %v1871_v10, %v1817_v60  ;;  %v1877_v15 = vadd.f32 %v1873_v11, %v1858_v61 }
 0x955   : > { %v1878_v16 = vmul.f32 0.7978846, %v1874_v12  ;;  %v1880_v18 = vmul.f32 0.7978846, %v1876_v13 }
 0x956   : > { %v1879_v19 = vmul.f32 0.7978846, %v1875_v14  ;;  %v1881_v27 = vmul.f32 0.7978846, %v1877_v15 }
 0x957   : > { %3111 = vtanh.f32 %v1878_v16 }
 0x958   : > { %3113 = vtanh.f32 %v1880_v18 }
 0x959   : > { %3115 = vtanh.f32 %v1879_v19 }
 0x95a   : > { %3117 = vtanh.f32 %v1881_v27 }
 0x961   : > { %v3112_v20 = vpop.eup %3111 }
 0x962   : > { %v3114_v21 = vpop.eup %3113  ;;  %v1886_v22 = vadd.f32 1.0, %v3112_v20 }
 0x963   : > { %v3116_v23 = vpop.eup %3115  ;;  %v1888_v24 = vadd.f32 1.0, %v3114_v21 }
 0x964   : > { %v3118_v2 = vpop.eup %3117  ;;  %v1887_v25 = vadd.f32 1.0, %v3116_v23  ;;  %v1890_v26 = vmul.f32 0.5, %v1886_v22 }
 0x965   : > { %v1889_v28 = vadd.f32 1.0, %v3118_v2  ;;  %v1892_v29 = vmul.f32 0.5, %v1888_v24 }
 0x966   : > { %v1891_v30 = vmul.f32 0.5, %v1887_v25  ;;  %v1894_v32 = vmul.f32 %v1890_v26, %v1815_v56 }
 0x967   : > { %v1893_v31 = vmul.f32 0.5, %v1889_v28  ;;  %v1896_v34 = vmul.f32 %v1892_v29, %v1856_v57 }
 0x968   : > { %v1895_v33 = vmul.f32 %v1891_v30, %v1817_v60  ;;  %v1898_v39 = vpack.c.bf16 %v1894_v32, %v1894_v32 }
 0x969   : > { %v1897_v35 = vmul.f32 %v1893_v31, %v1858_v61  ;;  %v1900_v40 = vpack.c.bf16 %v1896_v34, %v1896_v34 }
 0x96a   : > { %v1899_v36 = vpack.c.bf16 %v1895_v33, %v1895_v33 }
 0x96b   : > { %v1901_v38 = vpack.c.bf16 %v1897_v35, %v1897_v35 }
 0x96c   : > { %2197 = vmatprep.mubr.bf16.mxu1 %v1899_v36 }
 0x96d   : > { %2237 = vmatprep.mubr.bf16.mxu0 %v1901_v38  ;;  %2198 = vmatmul.mubr.bf16.vlgmr.msra.gmra.mrb[24].mxu1 %v1898_v39 }
 0x96e   : > { %2238 = vmatmul.mubr.bf16.vlgmr.msra.gmra.mrb[28].mxu0 %v1900_v40  ;;  %2822 = vmatpush3.bf16.msra.mxu1 %v3083_v37 }
 0x96f   : > { %2823 = vmatprep.subr.bf16.mxu1 %v3411_v5  ;;  %2837 = vmatprep.mubr.msk.bf16.mxu1 %vm3413_vm0, %v3411_v5 }
 0x972   : > { %2824 = vmatpush3.bf16.msra.mxu1 %v3084_v41 }
 0x973   : > { %2825 = vmatprep.subr.bf16.mxu1 %v3411_v5 }
 0x976   : > { %2826 = vmatpush3.bf16.msra.mxu1 %v3085_v42 }
 0x977   : > { %2827 = vmatprep.subr.bf16.mxu1 %v3411_v5 }
 0x97a   : > { %2828 = vmatpush3.bf16.msra.mxu1 %v3086_v43 }
 0x97b   : > { %2829 = vmatprep.subr.bf16.mxu1 %v3411_v5 }
 0x97e   : > { %2830 = vmatpush3.bf16.msra.mxu1 %v3087_v47 }
 0x97f   : > { %2831 = vmatprep.subr.bf16.mxu1 %v3411_v5 }
 0x982   : > { %2832 = vmatpush3.bf16.msra.mxu1 %v3088_v49 }
 0x983   : > { %2833 = vmatprep.subr.bf16.mxu1 %v3411_v5 }
 0x986   : > { %2834 = vmatpush3.bf16.msra.mxu1 %v3089_v50 }
 0x987   : > { %2835 = vmatprep.subr.bf16.mxu1 %v3411_v5 }
 0x98a   : > { %2836 = vmatpush3.bf16.msra.mxu1 %v3090_v51 }
 0xa40   : > { %v2696_v52 = vpop.f32.mrb[24].mxu1 }
 0xa41   : > { %v2718_v53 = vpop.f32.mrb[28].mxu0  ;;  %v2697_v55 = vpop.f32.mrb[25].mxu1 }
 0xa42   : > { %v2698_v56 = vadd.f32 %v2697_v55, %v2696_v52  ;;  %v2719_v57 = vpop.f32.mrb[29].mxu0  ;;  %v2699_v58 = vpop.f32.mrb[26].mxu1 }
 0xa43   : > { %v2720_v59 = vadd.f32 %v2719_v57, %v2718_v53  ;;  %v2721_v60 = vpop.f32.mrb[30].mxu0  ;;  %v2700_v61 = vpop.f32.mrb[27].mxu1 }
 0xa44   : > { %v2200_v63 = vadd.f32 %v2698_v56, %v2602_v54  ;;  %v2722_v0 = vpop.f32.mrb[31].mxu0 }
 0xa46   : > { %v2240_v5 = vadd.f32 %v2720_v59, %v2200_v63 }
 0xa48   : > { %v2246_v1 = vrot.slane %v2240_v5, 3 }
 0xa4a   : > { %v2248_v3 = vadd.f32 %v2246_v1, %v3907_v17 }
 0xa4c   : > { %v2249_v45 = vpack.c.bf16 %v2248_v3, %v2248_v3 }
 0xa4e   : > { %v2274_v4 = vshrl.u32 %v2249_v45, 16  ;;  %v2277_v62 = vshll.u32 %v2249_v45, 16 }
 0xa50   : > { %v2276_v46 = vrot.slane %v2274_v4, 2  ;;  %v2279_v6 = vrot.slane %v2277_v62, 3 }
 0xa52   : > { %v2280_v44 = vor.u32 %v2279_v6, %v2276_v46 }
 0xa54   : > { %2838 = vmatmul.mubr.bf16.vlgmr.msra.gmra.mrb[28].mxu1 %v2280_v44 }
 0xb27   : > { %v2364_v7 = vpop.f32.mrb[28].mxu1 }
 0xb28   : > { %v2365_v17 = vadd.f32 %v2635_v48, %v2364_v7  ;;  %v2839_v8 = vpop.f32.mrb[29].mxu1 }
 0xb29   : > { %v2367_v9 = vpop.f32.mrb[30].mxu1 }
 0xb2a   : > { %2370 = vst [vmem:[%s634_s13] sm:$0x7] %v2365_v17  ;;  %v2840_v10 = vpop.f32.mrb[31].mxu1 }
 0xb2b PF: > { %p30_p0 = scmp.ge.s32.totalorder %s3696_s0, 4   ;;  %s4026_s21 = smov %s3387_s22 }
 0xb2c   : > { %s4027_s22 = smov %s3391_s23  ;;  %s4028_s23 = smov %s3707_s30 }
 0xb2d   : > { %s4029_s24 = smov %s3696_s0  ;;  %32 = sbr.rel (!%p30_p0) target bundleno = 18 (0x12), region = 152 }
 0xb34   :  { %2390 = vsyncpa [#allocation3], 1 }
 0xb35   :  { %2392 = vsyncpa [#allocation3 + $0x1], 1 }
 0xb36   :  { %2393 = vsyncpa [#allocation5], 1 }
 0xb37   :  { %2394 = vsyncpa [#allocation8], 1 }
 0xb38   :  { %2395 = vsyncpa [#allocation11], 1 }
 0xb39   :  { %2396 = vsyncpa [#allocation14], 1 }

</bundles_post_ra>
